<compile_context>
chip_gen: v7x
topology: tpu7x:2x2x1
jax: 0.10.0
libtpu: 0.0.40
codegen_flags: <defaults>
</compile_context>

<pallas_src>
import functools
import math

import jax
import jax.numpy as jnp
from jax.experimental import pallas as pl
from jax.experimental.pallas import tpu as pltpu


# ---------------------------------------------------------------------------
# In-kernel helpers
# ---------------------------------------------------------------------------
def _tf_layer_norm(x, w, b, eps=1e-12):
    # TF-style LayerNorm: biased variance, eps inside the sqrt (matches the
    # custom LayerNorm class in Visual_Prompt.py).
    u = jnp.mean(x, axis=-1, keepdims=True)
    s = jnp.mean((x - u) ** 2, axis=-1, keepdims=True)
    return w * ((x - u) / jnp.sqrt(s + eps)) + b


def _quick_gelu(x):
    return x * jax.nn.sigmoid(1.702 * x)


# ---------------------------------------------------------------------------
# Fused kernel: grid = (batch_tiles, layers); one full ResidualAttentionBlock
# per grid step.  The f32 activation lives in the output block, which keeps
# the same block index along the layer axis and therefore stays VMEM-resident.
# ---------------------------------------------------------------------------
def fused_transformer_kernel(
        x_ref,
        ln1w_ref, ln1b_ref,
        wqkv_ref, bqkv_ref,
        wo_ref, bo_ref,
        ln2w_ref, ln2b_ref,
        w1_ref, b1_ref,
        w2_ref, b2_ref,
        o_ref,
        *, num_heads, resident_weights):
    layer = pl.program_id(1)

    bt, L, D = x_ref.shape
    M = bt * L
    dh = D // num_heads

    # Weight index: with resident weights the full (layers, ...) stack sits in
    # VMEM and we index it by layer; with streamed weights each grid step gets
    # a (1, ...) per-layer block.
    wi = layer if resident_weights else 0

    # Initialize the resident f32 accumulator (the output block) from the
    # input tile on the first layer of each batch tile.
    @pl.when(layer == 0)
    def _():
        o_ref[...] = x_ref[...].astype(o_ref.dtype)

    x = o_ref[...].reshape(M, D)                              # (M, D) f32

    # ----------------- attention branch: x = x + attn(ln_1(x)) -------------
    h = _tf_layer_norm(x, ln1w_ref[wi], ln1b_ref[wi]).astype(jnp.bfloat16)
    # Fused QKV projection; 1/sqrt(dh) already folded into Wq / bq.
    # Single bf16 cast for the whole (M, 3D) tensor.
    qkv = (jnp.dot(h, wqkv_ref[wi], preferred_element_type=jnp.float32)
           + bqkv_ref[wi]).astype(jnp.bfloat16)               # (M, 3D) bf16
    q = qkv[:, 0 * D:1 * D]
    k = qkv[:, 1 * D:2 * D]
    v = qkv[:, 2 * D:3 * D]

    # Per-head attention (sample-batched 3D einsums).  Head outputs are kept
    # in registers (bf16) and concatenated once, so the output projection is a
    # single full-width matmul and there is no VMEM scratch round trip.
    head_out = []
    for hd in range(num_heads):
        lo = hd * dh
        qh = q[:, lo:lo + dh].reshape(bt, L, dh)
        kh = k[:, lo:lo + dh].reshape(bt, L, dh)
        vh = v[:, lo:lo + dh].reshape(bt, L, dh)
        s = jnp.einsum('bqd,bkd->bqk', qh, kh,
                       preferred_element_type=jnp.float32)    # (bt, L, L)
        s = s - jnp.max(s, axis=-1, keepdims=True)
        p = jnp.exp(s)
        p = p * pl.reciprocal(jnp.sum(p, axis=-1, keepdims=True), approx=True)
        oh = jnp.einsum('bqk,bkd->bqd', p.astype(jnp.bfloat16), vh,
                        preferred_element_type=jnp.float32)   # (bt, L, dh)
        head_out.append(oh.reshape(M, dh).astype(jnp.bfloat16))
    ctx = head_out[0] if num_heads == 1 else jnp.concatenate(head_out, axis=-1)

    attn = jnp.dot(ctx, wo_ref[wi],
                   preferred_element_type=jnp.float32) + bo_ref[wi]
    x = x + attn

    # ----------------- MLP branch: x = x + mlp(ln_2(x)) ---------------------
    h2 = _tf_layer_norm(x, ln2w_ref[wi], ln2b_ref[wi]).astype(jnp.bfloat16)
    m = jnp.dot(h2, w1_ref[wi], preferred_element_type=jnp.float32) + b1_ref[wi]
    m = _quick_gelu(m).astype(jnp.bfloat16)
    m = jnp.dot(m, w2_ref[wi], preferred_element_type=jnp.float32) + b2_ref[wi]
    x = x + m

    # The output block keeps the same index along the layer axis, so this
    # write stays in VMEM until the last layer of this batch tile, then is
    # written back to HBM once.
    o_ref[...] = x.reshape(bt, L, D)


# ---------------------------------------------------------------------------
# Wrapper-side parameter preparation (stack layers, fuse QKV, fold scale, bf16)
# ---------------------------------------------------------------------------
_PARAM_ORDER = ('ln1_w', 'ln1_b', 'wqkv', 'bqkv', 'wo', 'bo',
                'ln2_w', 'ln2_b', 'w1', 'b1', 'w2', 'b2')


def _stack_params(layer_params, num_heads):
    D = layer_params[0]['wq'].shape[0]
    dh = D // num_heads
    scale = 1.0 / math.sqrt(dh)

    def st(fn, dtype=jnp.float32):
        return jnp.stack([fn(p) for p in layer_params], axis=0).astype(dtype)

    return dict(
        ln1_w=st(lambda p: p['ln1_w']),
        ln1_b=st(lambda p: p['ln1_b']),
        # fused QKV, attention scale folded into the Q part
        wqkv=st(lambda p: jnp.concatenate(
            [p['wq'] * scale, p['wk'], p['wv']], axis=-1), jnp.bfloat16),
        bqkv=st(lambda p: jnp.concatenate(
            [p['bq'] * scale, p['bk'], p['bv']], axis=-1)),
        wo=st(lambda p: p['wo'], jnp.bfloat16),
        bo=st(lambda p: p['bo']),
        ln2_w=st(lambda p: p['ln2_w']),
        ln2_b=st(lambda p: p['ln2_b']),
        w1=st(lambda p: p['w1'], jnp.bfloat16),
        b1=st(lambda p: p['b1']),
        w2=st(lambda p: p['w2'], jnp.bfloat16),
        b2=st(lambda p: p['b2']),
    )


def _vmem_capacity_bytes():
    """Physical per-TensorCore VMEM; fall back to 64 MiB (v7x) if unknown."""
    try:
        return int(getattr(pltpu.get_tpu_info(), "vmem_capacity_bytes"))
    except Exception:
        return 64 << 20


def temporal_transformer(x_lnd, layer_params, num_heads, b_tile=None):
    """x_lnd: (seq, batch, width) exactly like the PyTorch module."""
    L, N, D = x_lnd.shape
    n_layers = len(layer_params)
    sp = _stack_params(layer_params, num_heads)

    # (batch, seq, width); keep the residual stream in f32 inside the kernel.
    x = jnp.transpose(x_lnd, (1, 0, 2)).astype(jnp.float32)

    budget = int(_vmem_capacity_bytes() * 0.88)     # headroom for the compiler

    def need_bytes(bt_, resident):
        m_ = bt_ * L
        w_layer = 12 * D * D * 2 + 13 * D * 4       # bf16 weights + f32 biases/LN
        wb = 2 * (n_layers if resident else 1) * w_layer   # assume 2x buffers
        io = 2 * 2 * m_ * D * 4                     # x + out blocks, 2 buffers, f32
        inter = 48 * m_ * D                         # qkv / attn / mlp temporaries
        return wb + io + inter

    # --- tile size: target ~1024 rows per step (weight-DMA amortization), but
    # keep >=2 batch tiles when each still has >=256 rows (v7x megacore).
    if b_tile is None:
        target_m = 1024
        b_tile = max(1, min(N, max(1, target_m // max(L, 1))))
        if b_tile >= N and N >= 2 and ((N + 1) // 2) * L >= 256:
            b_tile = (N + 1) // 2
    b_tile = max(1, min(b_tile, N))

    # --- decide weight residency + shrink the tile until it fits the budget.
    resident = need_bytes(b_tile, True) <= budget
    while need_bytes(b_tile, resident) > budget and b_tile > 1:
        b_tile = max(1, (b_tile + 1) // 2)
        resident = need_bytes(b_tile, True) <= budget

    pad = (-N) % b_tile
    if pad:
        x = jnp.concatenate([x, jnp.zeros((pad, L, D), x.dtype)], axis=0)
    Np = N + pad
    n_btiles = Np // b_tile

    def wspec(arr):
        if resident:
            full = arr.shape
            # Constant block index: DMA'd once, stays resident; kernel indexes
            # w_ref[layer].
            return pl.BlockSpec(full, lambda b, l: (0,) * len(full))
        blk = (1,) + arr.shape[1:]
        nd = len(blk)
        return pl.BlockSpec(blk, lambda b, l: (l,) + (0,) * (nd - 1))

    in_specs = [pl.BlockSpec((b_tile, L, D), lambda b, l: (b, 0, 0))]
    in_specs += [wspec(sp[name]) for name in _PARAM_ORDER]
    out_spec = pl.BlockSpec((b_tile, L, D), lambda b, l: (b, 0, 0))

    vmem_limit = min(budget,
                     max(32 << 20,
                         int(need_bytes(b_tile, resident) * 1.25) + (8 << 20)))

    # Advisory cost estimate for the XLA scheduler.
    rows = Np * L
    dh = D // num_heads
    flops = n_layers * (2 * rows * 12 * D * D
                        + 4 * Np * num_heads * L * L * dh)
    transc = n_layers * (Np * num_heads * L * L + rows * 4 * D)
    bytes_acc = (2 * rows * D * 4
                 + (1 if resident else n_btiles) * n_layers
                 * (12 * D * D * 2 + 13 * D * 4))
    cost = pl.CostEstimate(flops=int(flops), transcendentals=int(transc),
                           bytes_accessed=int(bytes_acc))

    out = pl.pallas_call(
        functools.partial(fused_transformer_kernel, num_heads=num_heads,
                          resident_weights=resident),
        out_shape=jax.ShapeDtypeStruct((Np, L, D), jnp.float32),
        grid=(n_btiles, n_layers),
        in_specs=in_specs,
        out_specs=out_spec,
        compiler_params=pltpu.CompilerParams(
            dimension_semantics=("parallel", "arbitrary"),
            vmem_limit_bytes=int(vmem_limit)),
        cost_estimate=cost,
    )(x, *[sp[name] for name in _PARAM_ORDER])

    out = out[:N].astype(x_lnd.dtype)
    return jnp.transpose(out, (1, 0, 2))                      # -> (seq, batch, width)


# ---------------------------------------------------------------------------
# Deterministic synthetic parameter init (shapes implied by __init__), f32.
# ---------------------------------------------------------------------------
def init_params(key, width, layers):
    d = width
    params = []
    for i in range(layers):
        ks = jax.random.split(jax.random.fold_in(key, i), 10)
        nrm = lambda k, shape, std=0.02: jax.random.normal(k, shape, jnp.float32) * std
        params.append(dict(
            ln1_w=jnp.ones((1, d), jnp.float32),
            ln1_b=jnp.zeros((1, d), jnp.float32),
            wq=nrm(ks[0], (d, d)), wk=nrm(ks[1], (d, d)), wv=nrm(ks[2], (d, d)),
            bq=nrm(ks[3], (1, d)), bk=nrm(ks[4], (1, d)), bv=nrm(ks[5], (1, d)),
            wo=nrm(ks[6], (d, d)), bo=nrm(ks[7], (1, d)),
            ln2_w=jnp.ones((1, d), jnp.float32),
            ln2_b=jnp.zeros((1, d), jnp.float32),
            w1=nrm(ks[8], (d, 4 * d)), b1=jnp.zeros((1, 4 * d), jnp.float32),
            w2=nrm(ks[9], (4 * d, d)), b2=jnp.zeros((1, d), jnp.float32),
        ))
    return params


# ---------------------------------------------------------------------------
# Pure-JAX f32 reference (same math as the PyTorch module) for correctness.
# ---------------------------------------------------------------------------
def _ref_block(x, p, heads):                                  # x: (N, L, D)
    def ln(x, w, b, eps=1e-12):
        u = x.mean(-1, keepdims=True)
        s = ((x - u) ** 2).mean(-1, keepdims=True)
        return w[0] * ((x - u) / jnp.sqrt(s + eps)) + b[0]

    N, L, D = x.shape
    dh = D // heads
    h = ln(x, p['ln1_w'], p['ln1_b'])
    q = (h @ p['wq'] + p['bq'][0]).reshape(N, L, heads, dh).transpose(0, 2, 1, 3)
    k = (h @ p['wk'] + p['bk'][0]).reshape(N, L, heads, dh).transpose(0, 2, 1, 3)
    v = (h @ p['wv'] + p['bv'][0]).reshape(N, L, heads, dh).transpose(0, 2, 1, 3)
    s = jnp.einsum('nhqd,nhkd->nhqk', q * dh ** -0.5, k)
    a = jax.nn.softmax(s, axis=-1)
    o = jnp.einsum('nhqk,nhkd->nhqd', a, v).transpose(0, 2, 1, 3).reshape(N, L, D)
    x = x + o @ p['wo'] + p['bo'][0]
    h2 = ln(x, p['ln2_w'], p['ln2_b'])
    m = h2 @ p['w1'] + p['b1'][0]
    m = m * jax.nn.sigmoid(1.702 * m)
    return x + m @ p['w2'] + p['b2'][0]


def _ref_forward(x_lnd, params, heads):
    x = jnp.transpose(x_lnd, (1, 0, 2))
    for p in params:
        x = _ref_block(x, p, heads)
    return jnp.transpose(x, (1, 0, 2))


# ---------------------------------------------------------------------------
if __name__ == "__main__":
    seq, batch, width, heads, layers = 8, 2, 32, 4, 2

    key = jax.random.PRNGKey(0)
    kx, kp = jax.random.split(key)
    x = jax.random.normal(kx, (seq, batch, width), jnp.float32)   # (L, N, D)
    params = init_params(kp, width, layers)

    out = temporal_transformer(x, params, heads)
    out = jax.block_until_ready(out)

    ref = jax.block_until_ready(_ref_forward(x, params, heads))
    assert out.shape == (seq, batch, width)
    # Kernel runs matmul operands in bf16 (weights stored bf16) while the
    # reference is full f32, so allow bf16-level error.
    assert jnp.max(jnp.abs(out - ref)) < 2e-2, "mismatch vs pure-JAX reference"

    print("KERNEL_OK")
</pallas_src>

<mosaic_0001>
module attributes {stable_mosaic.version = 11 : i64} {
  func.func @fused_transformer_kernel(%arg0: i32, %arg1: i32, %arg2: memref<2x8x32xf32, #tpu.memory_space<vmem>>, %arg3: memref<2x1x32xf32, #tpu.memory_space<vmem>>, %arg4: memref<2x1x32xf32, #tpu.memory_space<vmem>>, %arg5: memref<2x32x96xbf16, #tpu.memory_space<vmem>>, %arg6: memref<2x1x96xf32, #tpu.memory_space<vmem>>, %arg7: memref<2x32x32xbf16, #tpu.memory_space<vmem>>, %arg8: memref<2x1x32xf32, #tpu.memory_space<vmem>>, %arg9: memref<2x1x32xf32, #tpu.memory_space<vmem>>, %arg10: memref<2x1x32xf32, #tpu.memory_space<vmem>>, %arg11: memref<2x32x128xbf16, #tpu.memory_space<vmem>>, %arg12: memref<2x1x128xf32, #tpu.memory_space<vmem>>, %arg13: memref<2x128x32xbf16, #tpu.memory_space<vmem>>, %arg14: memref<2x1x32xf32, #tpu.memory_space<vmem>>, %arg15: memref<2x8x32xf32, #tpu.memory_space<vmem>>) attributes {dimension_semantics = [#tpu.dimension_semantics<parallel>, #tpu.dimension_semantics<arbitrary>], iteration_bounds = array<i64: 1, 2>, scalar_prefetch = 0 : i64, scratch_operands = 0 : i64, tpu.core_type = #tpu.core_type<tc>, window_params = [{transform_indices = @transform_0, window_bounds = array<i64: 2, 8, 32>}, {pipeline_mode = #tpu.pipeline_mode<synchronous>, transform_indices = @transform_1, window_bounds = array<i64: 2, 1, 32>}, {pipeline_mode = #tpu.pipeline_mode<synchronous>, transform_indices = @transform_2, window_bounds = array<i64: 2, 1, 32>}, {pipeline_mode = #tpu.pipeline_mode<synchronous>, transform_indices = @transform_3, window_bounds = array<i64: 2, 32, 96>}, {pipeline_mode = #tpu.pipeline_mode<synchronous>, transform_indices = @transform_4, window_bounds = array<i64: 2, 1, 96>}, {pipeline_mode = #tpu.pipeline_mode<synchronous>, transform_indices = @transform_5, window_bounds = array<i64: 2, 32, 32>}, {pipeline_mode = #tpu.pipeline_mode<synchronous>, transform_indices = @transform_6, window_bounds = array<i64: 2, 1, 32>}, {pipeline_mode = #tpu.pipeline_mode<synchronous>, transform_indices = @transform_7, window_bounds = array<i64: 2, 1, 32>}, {pipeline_mode = #tpu.pipeline_mode<synchronous>, transform_indices = @transform_8, window_bounds = array<i64: 2, 1, 32>}, {pipeline_mode = #tpu.pipeline_mode<synchronous>, transform_indices = @transform_9, window_bounds = array<i64: 2, 32, 128>}, {pipeline_mode = #tpu.pipeline_mode<synchronous>, transform_indices = @transform_10, window_bounds = array<i64: 2, 1, 128>}, {pipeline_mode = #tpu.pipeline_mode<synchronous>, transform_indices = @transform_11, window_bounds = array<i64: 2, 128, 32>}, {pipeline_mode = #tpu.pipeline_mode<synchronous>, transform_indices = @transform_12, window_bounds = array<i64: 2, 1, 32>}, {transform_indices = @transform_13, window_bounds = array<i64: 2, 8, 32>}]} {
    %c0_i32 = arith.constant 0 : i32
    %0 = arith.cmpi eq, %arg1, %c0_i32 : i32
    %1 = arith.extui %0 : i1 to i32
    %c0_i32_0 = arith.constant 0 : i32
    %2 = arith.cmpi ne, %1, %c0_i32_0 : i32
    scf.if %2 {
      %c0_61 = arith.constant 0 : index
      %c0_62 = arith.constant 0 : index
      %c0_63 = arith.constant 0 : index
      %201 = vector.load %arg2[%c0_61, %c0_62, %c0_63] : memref<2x8x32xf32, #tpu.memory_space<vmem>>, vector<2x8x32xf32>
      %c0_64 = arith.constant 0 : index
      %c0_65 = arith.constant 0 : index
      %c0_66 = arith.constant 0 : index
      %202 = vector.load %arg15[%c0_64, %c0_65, %c0_66] : memref<2x8x32xf32, #tpu.memory_space<vmem>>, vector<2x8x32xf32>
      tpu.vector_store %arg15[%c0_64, %c0_65, %c0_66], %201 {strides = array<i32>} : memref<2x8x32xf32, #tpu.memory_space<vmem>>, vector<2x8x32xf32>,
    } else {
    }
    %c0 = arith.constant 0 : index
    %c0_1 = arith.constant 0 : index
    %c0_2 = arith.constant 0 : index
    %3 = vector.load %arg15[%c0, %c0_1, %c0_2] : memref<2x8x32xf32, #tpu.memory_space<vmem>>, vector<2x8x32xf32>
    %4 = vector.shape_cast %3 : vector<2x8x32xf32> to vector<16x32xf32>
    %5 = arith.index_cast %arg1 : i32 to index
    %c0_3 = arith.constant 0 : index
    %c0_4 = arith.constant 0 : index
    %6 = vector.load %arg3[%5, %c0_3, %c0_4] : memref<2x1x32xf32, #tpu.memory_space<vmem>>, vector<1x1x32xf32>
    %7 = vector.shape_cast %6 : vector<1x1x32xf32> to vector<1x32xf32>
    %8 = arith.index_cast %arg1 : i32 to index
    %c0_5 = arith.constant 0 : index
    %c0_6 = arith.constant 0 : index
    %9 = vector.load %arg4[%8, %c0_5, %c0_6] : memref<2x1x32xf32, #tpu.memory_space<vmem>>, vector<1x1x32xf32>
    %10 = vector.shape_cast %9 : vector<1x1x32xf32> to vector<1x32xf32>
    %cst = arith.constant dense<0.000000e+00> : vector<16xf32>
    %11 = vector.multi_reduction <add>, %4, %cst [1] : vector<16x32xf32> to vector<16xf32>
    %12 = vector.shape_cast %11 : vector<16xf32> to vector<16x1xf32>
    %cst_7 = arith.constant 3.200000e+01 : f32
    %13 = vector.broadcast %cst_7 : f32 to vector<16x1xf32>
    %14 = arith.divf %12, %13 : vector<16x1xf32>
    %15 = vector.broadcast %14 : vector<16x1xf32> to vector<16x32xf32>
    %16 = arith.subf %4, %15 : vector<16x32xf32>
    %17 = arith.mulf %16, %16 : vector<16x32xf32>
    %cst_8 = arith.constant dense<0.000000e+00> : vector<16xf32>
    %18 = vector.multi_reduction <add>, %17, %cst_8 [1] : vector<16x32xf32> to vector<16xf32>
    %19 = vector.shape_cast %18 : vector<16xf32> to vector<16x1xf32>
    %cst_9 = arith.constant 3.200000e+01 : f32
    %20 = vector.broadcast %cst_9 : f32 to vector<16x1xf32>
    %21 = arith.divf %19, %20 : vector<16x1xf32>
    %22 = vector.broadcast %14 : vector<16x1xf32> to vector<16x32xf32>
    %23 = arith.subf %4, %22 : vector<16x32xf32>
    %cst_10 = arith.constant 9.99999996E-13 : f32
    %24 = vector.broadcast %cst_10 : f32 to vector<16x1xf32>
    %25 = arith.addf %21, %24 : vector<16x1xf32>
    %26 = math.sqrt %25 : vector<16x1xf32>
    %27 = vector.broadcast %26 : vector<16x1xf32> to vector<16x32xf32>
    %28 = arith.divf %23, %27 : vector<16x32xf32>
    %29 = vector.broadcast %7 : vector<1x32xf32> to vector<16x32xf32>
    %30 = arith.mulf %29, %28 : vector<16x32xf32>
    %31 = vector.broadcast %10 : vector<1x32xf32> to vector<16x32xf32>
    %32 = arith.addf %30, %31 : vector<16x32xf32>
    %33 = arith.truncf %32 : vector<16x32xf32> to vector<16x32xbf16>
    %34 = arith.index_cast %arg1 : i32 to index
    %c0_11 = arith.constant 0 : index
    %c0_12 = arith.constant 0 : index
    %35 = vector.load %arg5[%34, %c0_11, %c0_12] : memref<2x32x96xbf16, #tpu.memory_space<vmem>>, vector<1x32x96xbf16>
    %36 = vector.shape_cast %35 : vector<1x32x96xbf16> to vector<32x96xbf16>
    %cst_13 = arith.constant dense<0.000000e+00> : vector<16x96xf32>
    %37 = tpu.matmul %33, %36, %cst_13 {dimension_numbers = #tpu.dot_dimension_numbers<[1], [0], [0], [1], [0, 0, 1, 1], [], []>} : vector<16x32xbf16>, vector<32x96xbf16>, vector<16x96xf32> -> vector<16x96xf32>
    %38 = arith.index_cast %arg1 : i32 to index
    %c0_14 = arith.constant 0 : index
    %c0_15 = arith.constant 0 : index
    %39 = vector.load %arg6[%38, %c0_14, %c0_15] : memref<2x1x96xf32, #tpu.memory_space<vmem>>, vector<1x1x96xf32>
    %40 = vector.shape_cast %39 : vector<1x1x96xf32> to vector<1x96xf32>
    %41 = vector.broadcast %40 : vector<1x96xf32> to vector<16x96xf32>
    %42 = arith.addf %37, %41 : vector<16x96xf32>
    %43 = arith.truncf %42 : vector<16x96xf32> to vector<16x96xbf16>
    %44 = vector.extract_strided_slice %43 {offsets = [0, 0], sizes = [16, 32], strides = [1, 1]} : vector<16x96xbf16> to vector<16x32xbf16>
    %45 = vector.extract_strided_slice %43 {offsets = [0, 32], sizes = [16, 32], strides = [1, 1]} : vector<16x96xbf16> to vector<16x32xbf16>
    %46 = vector.extract_strided_slice %43 {offsets = [0, 64], sizes = [16, 32], strides = [1, 1]} : vector<16x96xbf16> to vector<16x32xbf16>
    %47 = vector.extract_strided_slice %44 {offsets = [0, 0], sizes = [16, 8], strides = [1, 1]} : vector<16x32xbf16> to vector<16x8xbf16>
    %48 = vector.shape_cast %47 : vector<16x8xbf16> to vector<2x8x8xbf16>
    %49 = vector.extract_strided_slice %45 {offsets = [0, 0], sizes = [16, 8], strides = [1, 1]} : vector<16x32xbf16> to vector<16x8xbf16>
    %50 = vector.shape_cast %49 : vector<16x8xbf16> to vector<2x8x8xbf16>
    %51 = vector.extract_strided_slice %46 {offsets = [0, 0], sizes = [16, 8], strides = [1, 1]} : vector<16x32xbf16> to vector<16x8xbf16>
    %52 = vector.shape_cast %51 : vector<16x8xbf16> to vector<2x8x8xbf16>
    "tpu.trace_start"() <{level = 10 : i32, message = "bqd,bkd->bqk"}> : () -> ()
    %cst_16 = arith.constant dense<0.000000e+00> : vector<2x8x8xf32>
    %53 = tpu.matmul %48, %50, %cst_16 {dimension_numbers = #tpu.dot_dimension_numbers<[2], [2], [1], [1], [0, 0, 0, 1, 1, 1], [0], [0]>} : vector<2x8x8xbf16>, vector<2x8x8xbf16>, vector<2x8x8xf32> -> vector<2x8x8xf32>
    "tpu.trace_stop"() : () -> ()
    %cst_17 = arith.constant dense<0xFF800000> : vector<2x8xf32>
    %54 = vector.multi_reduction <maximumf>, %53, %cst_17 [2] : vector<2x8x8xf32> to vector<2x8xf32>
    %55 = vector.shape_cast %54 : vector<2x8xf32> to vector<2x8x1xf32>
    %56 = vector.broadcast %55 : vector<2x8x1xf32> to vector<2x8x8xf32>
    %57 = arith.subf %53, %56 : vector<2x8x8xf32>
    %58 = math.exp %57 : vector<2x8x8xf32>
    %cst_18 = arith.constant dense<0.000000e+00> : vector<2x8xf32>
    %59 = vector.multi_reduction <add>, %58, %cst_18 [2] : vector<2x8x8xf32> to vector<2x8xf32>
    %60 = vector.shape_cast %59 : vector<2x8xf32> to vector<2x8x1xf32>
    %61 = tpu.reciprocal %60 {approx = true} : vector<2x8x1xf32> -> vector<2x8x1xf32>
    %62 = vector.broadcast %61 : vector<2x8x1xf32> to vector<2x8x8xf32>
    %63 = arith.mulf %58, %62 : vector<2x8x8xf32>
    %64 = arith.truncf %63 : vector<2x8x8xf32> to vector<2x8x8xbf16>
    "tpu.trace_start"() <{level = 10 : i32, message = "bqk,bkd->bqd"}> : () -> ()
    %cst_19 = arith.constant dense<0.000000e+00> : vector<2x8x8xf32>
    %65 = tpu.matmul %64, %52, %cst_19 {dimension_numbers = #tpu.dot_dimension_numbers<[2], [1], [1], [2], [0, 0, 0, 1, 1, 2], [0], [0]>} : vector<2x8x8xbf16>, vector<2x8x8xbf16>, vector<2x8x8xf32> -> vector<2x8x8xf32>
    "tpu.trace_stop"() : () -> ()
    %66 = vector.shape_cast %65 : vector<2x8x8xf32> to vector<16x8xf32>
    %67 = arith.truncf %66 : vector<16x8xf32> to vector<16x8xbf16>
    %68 = vector.extract_strided_slice %44 {offsets = [0, 8], sizes = [16, 8], strides = [1, 1]} : vector<16x32xbf16> to vector<16x8xbf16>
    %69 = vector.shape_cast %68 : vector<16x8xbf16> to vector<2x8x8xbf16>
    %70 = vector.extract_strided_slice %45 {offsets = [0, 8], sizes = [16, 8], strides = [1, 1]} : vector<16x32xbf16> to vector<16x8xbf16>
    %71 = vector.shape_cast %70 : vector<16x8xbf16> to vector<2x8x8xbf16>
    %72 = vector.extract_strided_slice %46 {offsets = [0, 8], sizes = [16, 8], strides = [1, 1]} : vector<16x32xbf16> to vector<16x8xbf16>
    %73 = vector.shape_cast %72 : vector<16x8xbf16> to vector<2x8x8xbf16>
    "tpu.trace_start"() <{level = 10 : i32, message = "bqd,bkd->bqk"}> : () -> ()
    %cst_20 = arith.constant dense<0.000000e+00> : vector<2x8x8xf32>
    %74 = tpu.matmul %69, %71, %cst_20 {dimension_numbers = #tpu.dot_dimension_numbers<[2], [2], [1], [1], [0, 0, 0, 1, 1, 1], [0], [0]>} : vector<2x8x8xbf16>, vector<2x8x8xbf16>, vector<2x8x8xf32> -> vector<2x8x8xf32>
    "tpu.trace_stop"() : () -> ()
    %cst_21 = arith.constant dense<0xFF800000> : vector<2x8xf32>
    %75 = vector.multi_reduction <maximumf>, %74, %cst_21 [2] : vector<2x8x8xf32> to vector<2x8xf32>
    %76 = vector.shape_cast %75 : vector<2x8xf32> to vector<2x8x1xf32>
    %77 = vector.broadcast %76 : vector<2x8x1xf32> to vector<2x8x8xf32>
    %78 = arith.subf %74, %77 : vector<2x8x8xf32>
    %79 = math.exp %78 : vector<2x8x8xf32>
    %cst_22 = arith.constant dense<0.000000e+00> : vector<2x8xf32>
    %80 = vector.multi_reduction <add>, %79, %cst_22 [2] : vector<2x8x8xf32> to vector<2x8xf32>
    %81 = vector.shape_cast %80 : vector<2x8xf32> to vector<2x8x1xf32>
    %82 = tpu.reciprocal %81 {approx = true} : vector<2x8x1xf32> -> vector<2x8x1xf32>
    %83 = vector.broadcast %82 : vector<2x8x1xf32> to vector<2x8x8xf32>
    %84 = arith.mulf %79, %83 : vector<2x8x8xf32>
    %85 = arith.truncf %84 : vector<2x8x8xf32> to vector<2x8x8xbf16>
    "tpu.trace_start"() <{level = 10 : i32, message = "bqk,bkd->bqd"}> : () -> ()
    %cst_23 = arith.constant dense<0.000000e+00> : vector<2x8x8xf32>
    %86 = tpu.matmul %85, %73, %cst_23 {dimension_numbers = #tpu.dot_dimension_numbers<[2], [1], [1], [2], [0, 0, 0, 1, 1, 2], [0], [0]>} : vector<2x8x8xbf16>, vector<2x8x8xbf16>, vector<2x8x8xf32> -> vector<2x8x8xf32>
    "tpu.trace_stop"() : () -> ()
    %87 = vector.shape_cast %86 : vector<2x8x8xf32> to vector<16x8xf32>
    %88 = arith.truncf %87 : vector<16x8xf32> to vector<16x8xbf16>
    %89 = vector.extract_strided_slice %44 {offsets = [0, 16], sizes = [16, 8], strides = [1, 1]} : vector<16x32xbf16> to vector<16x8xbf16>
    %90 = vector.shape_cast %89 : vector<16x8xbf16> to vector<2x8x8xbf16>
    %91 = vector.extract_strided_slice %45 {offsets = [0, 16], sizes = [16, 8], strides = [1, 1]} : vector<16x32xbf16> to vector<16x8xbf16>
    %92 = vector.shape_cast %91 : vector<16x8xbf16> to vector<2x8x8xbf16>
    %93 = vector.extract_strided_slice %46 {offsets = [0, 16], sizes = [16, 8], strides = [1, 1]} : vector<16x32xbf16> to vector<16x8xbf16>
    %94 = vector.shape_cast %93 : vector<16x8xbf16> to vector<2x8x8xbf16>
    "tpu.trace_start"() <{level = 10 : i32, message = "bqd,bkd->bqk"}> : () -> ()
    %cst_24 = arith.constant dense<0.000000e+00> : vector<2x8x8xf32>
    %95 = tpu.matmul %90, %92, %cst_24 {dimension_numbers = #tpu.dot_dimension_numbers<[2], [2], [1], [1], [0, 0, 0, 1, 1, 1], [0], [0]>} : vector<2x8x8xbf16>, vector<2x8x8xbf16>, vector<2x8x8xf32> -> vector<2x8x8xf32>
    "tpu.trace_stop"() : () -> ()
    %cst_25 = arith.constant dense<0xFF800000> : vector<2x8xf32>
    %96 = vector.multi_reduction <maximumf>, %95, %cst_25 [2] : vector<2x8x8xf32> to vector<2x8xf32>
    %97 = vector.shape_cast %96 : vector<2x8xf32> to vector<2x8x1xf32>
    %98 = vector.broadcast %97 : vector<2x8x1xf32> to vector<2x8x8xf32>
    %99 = arith.subf %95, %98 : vector<2x8x8xf32>
    %100 = math.exp %99 : vector<2x8x8xf32>
    %cst_26 = arith.constant dense<0.000000e+00> : vector<2x8xf32>
    %101 = vector.multi_reduction <add>, %100, %cst_26 [2] : vector<2x8x8xf32> to vector<2x8xf32>
    %102 = vector.shape_cast %101 : vector<2x8xf32> to vector<2x8x1xf32>
    %103 = tpu.reciprocal %102 {approx = true} : vector<2x8x1xf32> -> vector<2x8x1xf32>
    %104 = vector.broadcast %103 : vector<2x8x1xf32> to vector<2x8x8xf32>
    %105 = arith.mulf %100, %104 : vector<2x8x8xf32>
    %106 = arith.truncf %105 : vector<2x8x8xf32> to vector<2x8x8xbf16>
    "tpu.trace_start"() <{level = 10 : i32, message = "bqk,bkd->bqd"}> : () -> ()
    %cst_27 = arith.constant dense<0.000000e+00> : vector<2x8x8xf32>
    %107 = tpu.matmul %106, %94, %cst_27 {dimension_numbers = #tpu.dot_dimension_numbers<[2], [1], [1], [2], [0, 0, 0, 1, 1, 2], [0], [0]>} : vector<2x8x8xbf16>, vector<2x8x8xbf16>, vector<2x8x8xf32> -> vector<2x8x8xf32>
    "tpu.trace_stop"() : () -> ()
    %108 = vector.shape_cast %107 : vector<2x8x8xf32> to vector<16x8xf32>
    %109 = arith.truncf %108 : vector<16x8xf32> to vector<16x8xbf16>
    %110 = vector.extract_strided_slice %44 {offsets = [0, 24], sizes = [16, 8], strides = [1, 1]} : vector<16x32xbf16> to vector<16x8xbf16>
    %111 = vector.shape_cast %110 : vector<16x8xbf16> to vector<2x8x8xbf16>
    %112 = vector.extract_strided_slice %45 {offsets = [0, 24], sizes = [16, 8], strides = [1, 1]} : vector<16x32xbf16> to vector<16x8xbf16>
    %113 = vector.shape_cast %112 : vector<16x8xbf16> to vector<2x8x8xbf16>
    %114 = vector.extract_strided_slice %46 {offsets = [0, 24], sizes = [16, 8], strides = [1, 1]} : vector<16x32xbf16> to vector<16x8xbf16>
    %115 = vector.shape_cast %114 : vector<16x8xbf16> to vector<2x8x8xbf16>
    "tpu.trace_start"() <{level = 10 : i32, message = "bqd,bkd->bqk"}> : () -> ()
    %cst_28 = arith.constant dense<0.000000e+00> : vector<2x8x8xf32>
    %116 = tpu.matmul %111, %113, %cst_28 {dimension_numbers = #tpu.dot_dimension_numbers<[2], [2], [1], [1], [0, 0, 0, 1, 1, 1], [0], [0]>} : vector<2x8x8xbf16>, vector<2x8x8xbf16>, vector<2x8x8xf32> -> vector<2x8x8xf32>
    "tpu.trace_stop"() : () -> ()
    %cst_29 = arith.constant dense<0xFF800000> : vector<2x8xf32>
    %117 = vector.multi_reduction <maximumf>, %116, %cst_29 [2] : vector<2x8x8xf32> to vector<2x8xf32>
    %118 = vector.shape_cast %117 : vector<2x8xf32> to vector<2x8x1xf32>
    %119 = vector.broadcast %118 : vector<2x8x1xf32> to vector<2x8x8xf32>
    %120 = arith.subf %116, %119 : vector<2x8x8xf32>
    %121 = math.exp %120 : vector<2x8x8xf32>
    %cst_30 = arith.constant dense<0.000000e+00> : vector<2x8xf32>
    %122 = vector.multi_reduction <add>, %121, %cst_30 [2] : vector<2x8x8xf32> to vector<2x8xf32>
    %123 = vector.shape_cast %122 : vector<2x8xf32> to vector<2x8x1xf32>
    %124 = tpu.reciprocal %123 {approx = true} : vector<2x8x1xf32> -> vector<2x8x1xf32>
    %125 = vector.broadcast %124 : vector<2x8x1xf32> to vector<2x8x8xf32>
    %126 = arith.mulf %121, %125 : vector<2x8x8xf32>
    %127 = arith.truncf %126 : vector<2x8x8xf32> to vector<2x8x8xbf16>
    "tpu.trace_start"() <{level = 10 : i32, message = "bqk,bkd->bqd"}> : () -> ()
    %cst_31 = arith.constant dense<0.000000e+00> : vector<2x8x8xf32>
    %128 = tpu.matmul %127, %115, %cst_31 {dimension_numbers = #tpu.dot_dimension_numbers<[2], [1], [1], [2], [0, 0, 0, 1, 1, 2], [0], [0]>} : vector<2x8x8xbf16>, vector<2x8x8xbf16>, vector<2x8x8xf32> -> vector<2x8x8xf32>
    "tpu.trace_stop"() : () -> ()
    %129 = vector.shape_cast %128 : vector<2x8x8xf32> to vector<16x8xf32>
    %130 = arith.truncf %129 : vector<16x8xf32> to vector<16x8xbf16>
    %131 = tpu.concatenate %67, %88, %109, %130 in 1 : vector<16x8xbf16>, vector<16x8xbf16>, vector<16x8xbf16>, vector<16x8xbf16> -> vector<16x32xbf16>
    %132 = arith.index_cast %arg1 : i32 to index
    %c0_32 = arith.constant 0 : index
    %c0_33 = arith.constant 0 : index
    %133 = vector.load %arg7[%132, %c0_32, %c0_33] : memref<2x32x32xbf16, #tpu.memory_space<vmem>>, vector<1x32x32xbf16>
    %134 = vector.shape_cast %133 : vector<1x32x32xbf16> to vector<32x32xbf16>
    %cst_34 = arith.constant dense<0.000000e+00> : vector<16x32xf32>
    %135 = tpu.matmul %131, %134, %cst_34 {dimension_numbers = #tpu.dot_dimension_numbers<[1], [0], [0], [1], [0, 0, 1, 1], [], []>} : vector<16x32xbf16>, vector<32x32xbf16>, vector<16x32xf32> -> vector<16x32xf32>
    %136 = arith.index_cast %arg1 : i32 to index
    %c0_35 = arith.constant 0 : index
    %c0_36 = arith.constant 0 : index
    %137 = vector.load %arg8[%136, %c0_35, %c0_36] : memref<2x1x32xf32, #tpu.memory_space<vmem>>, vector<1x1x32xf32>
    %138 = vector.shape_cast %137 : vector<1x1x32xf32> to vector<1x32xf32>
    %139 = vector.broadcast %138 : vector<1x32xf32> to vector<16x32xf32>
    %140 = arith.addf %135, %139 : vector<16x32xf32>
    %141 = arith.addf %4, %140 : vector<16x32xf32>
    %142 = arith.index_cast %arg1 : i32 to index
    %c0_37 = arith.constant 0 : index
    %c0_38 = arith.constant 0 : index
    %143 = vector.load %arg9[%142, %c0_37, %c0_38] : memref<2x1x32xf32, #tpu.memory_space<vmem>>, vector<1x1x32xf32>
    %144 = vector.shape_cast %143 : vector<1x1x32xf32> to vector<1x32xf32>
    %145 = arith.index_cast %arg1 : i32 to index
    %c0_39 = arith.constant 0 : index
    %c0_40 = arith.constant 0 : index
    %146 = vector.load %arg10[%145, %c0_39, %c0_40] : memref<2x1x32xf32, #tpu.memory_space<vmem>>, vector<1x1x32xf32>
    %147 = vector.shape_cast %146 : vector<1x1x32xf32> to vector<1x32xf32>
    %cst_41 = arith.constant dense<0.000000e+00> : vector<16xf32>
    %148 = vector.multi_reduction <add>, %141, %cst_41 [1] : vector<16x32xf32> to vector<16xf32>
    %149 = vector.shape_cast %148 : vector<16xf32> to vector<16x1xf32>
    %cst_42 = arith.constant 3.200000e+01 : f32
    %150 = vector.broadcast %cst_42 : f32 to vector<16x1xf32>
    %151 = arith.divf %149, %150 : vector<16x1xf32>
    %152 = vector.broadcast %151 : vector<16x1xf32> to vector<16x32xf32>
    %153 = arith.subf %141, %152 : vector<16x32xf32>
    %154 = arith.mulf %153, %153 : vector<16x32xf32>
    %cst_43 = arith.constant dense<0.000000e+00> : vector<16xf32>
    %155 = vector.multi_reduction <add>, %154, %cst_43 [1] : vector<16x32xf32> to vector<16xf32>
    %156 = vector.shape_cast %155 : vector<16xf32> to vector<16x1xf32>
    %cst_44 = arith.constant 3.200000e+01 : f32
    %157 = vector.broadcast %cst_44 : f32 to vector<16x1xf32>
    %158 = arith.divf %156, %157 : vector<16x1xf32>
    %159 = vector.broadcast %151 : vector<16x1xf32> to vector<16x32xf32>
    %160 = arith.subf %141, %159 : vector<16x32xf32>
    %cst_45 = arith.constant 9.99999996E-13 : f32
    %161 = vector.broadcast %cst_45 : f32 to vector<16x1xf32>
    %162 = arith.addf %158, %161 : vector<16x1xf32>
    %163 = math.sqrt %162 : vector<16x1xf32>
    %164 = vector.broadcast %163 : vector<16x1xf32> to vector<16x32xf32>
    %165 = arith.divf %160, %164 : vector<16x32xf32>
    %166 = vector.broadcast %144 : vector<1x32xf32> to vector<16x32xf32>
    %167 = arith.mulf %166, %165 : vector<16x32xf32>
    %168 = vector.broadcast %147 : vector<1x32xf32> to vector<16x32xf32>
    %169 = arith.addf %167, %168 : vector<16x32xf32>
    %170 = arith.truncf %169 : vector<16x32xf32> to vector<16x32xbf16>
    %171 = arith.index_cast %arg1 : i32 to index
    %c0_46 = arith.constant 0 : index
    %c0_47 = arith.constant 0 : index
    %172 = vector.load %arg11[%171, %c0_46, %c0_47] : memref<2x32x128xbf16, #tpu.memory_space<vmem>>, vector<1x32x128xbf16>
    %173 = vector.shape_cast %172 : vector<1x32x128xbf16> to vector<32x128xbf16>
    %cst_48 = arith.constant dense<0.000000e+00> : vector<16x128xf32>
    %174 = tpu.matmul %170, %173, %cst_48 {dimension_numbers = #tpu.dot_dimension_numbers<[1], [0], [0], [1], [0, 0, 1, 1], [], []>} : vector<16x32xbf16>, vector<32x128xbf16>, vector<16x128xf32> -> vector<16x128xf32>
    %175 = arith.index_cast %arg1 : i32 to index
    %c0_49 = arith.constant 0 : index
    %c0_50 = arith.constant 0 : index
    %176 = vector.load %arg12[%175, %c0_49, %c0_50] : memref<2x1x128xf32, #tpu.memory_space<vmem>>, vector<1x1x128xf32>
    %177 = vector.shape_cast %176 : vector<1x1x128xf32> to vector<1x128xf32>
    %178 = vector.broadcast %177 : vector<1x128xf32> to vector<16x128xf32>
    %179 = arith.addf %174, %178 : vector<16x128xf32>
    %cst_51 = arith.constant 1.702000e+00 : f32
    %180 = vector.broadcast %cst_51 : f32 to vector<16x128xf32>
    %181 = arith.mulf %180, %179 : vector<16x128xf32>
    %182 = arith.negf %181 : vector<16x128xf32>
    %183 = math.exp %182 : vector<16x128xf32>
    %cst_52 = arith.constant 1.000000e+00 : f32
    %184 = vector.broadcast %cst_52 : f32 to vector<16x128xf32>
    %185 = arith.addf %184, %183 : vector<16x128xf32>
    %186 = arith.divf %184, %185 : vector<16x128xf32>
    %187 = arith.mulf %179, %186 : vector<16x128xf32>
    %188 = arith.truncf %187 : vector<16x128xf32> to vector<16x128xbf16>
    %189 = arith.index_cast %arg1 : i32 to index
    %c0_53 = arith.constant 0 : index
    %c0_54 = arith.constant 0 : index
    %190 = vector.load %arg13[%189, %c0_53, %c0_54] : memref<2x128x32xbf16, #tpu.memory_space<vmem>>, vector<1x128x32xbf16>
    %191 = vector.shape_cast %190 : vector<1x128x32xbf16> to vector<128x32xbf16>
    %cst_55 = arith.constant dense<0.000000e+00> : vector<16x32xf32>
    %192 = tpu.matmul %188, %191, %cst_55 {dimension_numbers = #tpu.dot_dimension_numbers<[1], [0], [0], [1], [0, 0, 1, 1], [], []>} : vector<16x128xbf16>, vector<128x32xbf16>, vector<16x32xf32> -> vector<16x32xf32>
    %193 = arith.index_cast %arg1 : i32 to index
    %c0_56 = arith.constant 0 : index
    %c0_57 = arith.constant 0 : index
    %194 = vector.load %arg14[%193, %c0_56, %c0_57] : memref<2x1x32xf32, #tpu.memory_space<vmem>>, vector<1x1x32xf32>
    %195 = vector.shape_cast %194 : vector<1x1x32xf32> to vector<1x32xf32>
    %196 = vector.broadcast %195 : vector<1x32xf32> to vector<16x32xf32>
    %197 = arith.addf %192, %196 : vector<16x32xf32>
    %198 = arith.addf %141, %197 : vector<16x32xf32>
    %199 = vector.shape_cast %198 : vector<16x32xf32> to vector<2x8x32xf32>
    %c0_58 = arith.constant 0 : index
    %c0_59 = arith.constant 0 : index
    %c0_60 = arith.constant 0 : index
    %200 = vector.load %arg15[%c0_58, %c0_59, %c0_60] : memref<2x8x32xf32, #tpu.memory_space<vmem>>, vector<2x8x32xf32>
    tpu.vector_store %arg15[%c0_58, %c0_59, %c0_60], %199 {strides = array<i32>} : memref<2x8x32xf32, #tpu.memory_space<vmem>>, vector<2x8x32xf32>,
    return
  }
  func.func @transform_0(%arg0: i32, %arg1: i32) -> (i32, i32, i32) {
    %c0_i32 = arith.constant 0 : i32
    %c0_i32_0 = arith.constant 0 : i32
    %c0_i32_1 = arith.constant 0 : i32
    return %arg0, %c0_i32, %c0_i32_0 : i32, i32, i32
  }
  func.func @transform_1(%arg0: i32, %arg1: i32) -> (i32, i32, i32) {
    %c0_i32 = arith.constant 0 : i32
    %c0_i32_0 = arith.constant 0 : i32
    %c0_i32_1 = arith.constant 0 : i32
    %c0_i32_2 = arith.constant 0 : i32
    return %c0_i32, %c0_i32_0, %c0_i32_1 : i32, i32, i32
  }
  func.func @transform_2(%arg0: i32, %arg1: i32) -> (i32, i32, i32) {
    %c0_i32 = arith.constant 0 : i32
    %c0_i32_0 = arith.constant 0 : i32
    %c0_i32_1 = arith.constant 0 : i32
    %c0_i32_2 = arith.constant 0 : i32
    return %c0_i32, %c0_i32_0, %c0_i32_1 : i32, i32, i32
  }
  func.func @transform_3(%arg0: i32, %arg1: i32) -> (i32, i32, i32) {
    %c0_i32 = arith.constant 0 : i32
    %c0_i32_0 = arith.constant 0 : i32
    %c0_i32_1 = arith.constant 0 : i32
    %c0_i32_2 = arith.constant 0 : i32
    return %c0_i32, %c0_i32_0, %c0_i32_1 : i32, i32, i32
  }
  func.func @transform_4(%arg0: i32, %arg1: i32) -> (i32, i32, i32) {
    %c0_i32 = arith.constant 0 : i32
    %c0_i32_0 = arith.constant 0 : i32
    %c0_i32_1 = arith.constant 0 : i32
    %c0_i32_2 = arith.constant 0 : i32
    return %c0_i32, %c0_i32_0, %c0_i32_1 : i32, i32, i32
  }
  func.func @transform_5(%arg0: i32, %arg1: i32) -> (i32, i32, i32) {
    %c0_i32 = arith.constant 0 : i32
    %c0_i32_0 = arith.constant 0 : i32
    %c0_i32_1 = arith.constant 0 : i32
    %c0_i32_2 = arith.constant 0 : i32
    return %c0_i32, %c0_i32_0, %c0_i32_1 : i32, i32, i32
  }
  func.func @transform_6(%arg0: i32, %arg1: i32) -> (i32, i32, i32) {
    %c0_i32 = arith.constant 0 : i32
    %c0_i32_0 = arith.constant 0 : i32
    %c0_i32_1 = arith.constant 0 : i32
    %c0_i32_2 = arith.constant 0 : i32
    return %c0_i32, %c0_i32_0, %c0_i32_1 : i32, i32, i32
  }
  func.func @transform_7(%arg0: i32, %arg1: i32) -> (i32, i32, i32) {
    %c0_i32 = arith.constant 0 : i32
    %c0_i32_0 = arith.constant 0 : i32
    %c0_i32_1 = arith.constant 0 : i32
    %c0_i32_2 = arith.constant 0 : i32
    return %c0_i32, %c0_i32_0, %c0_i32_1 : i32, i32, i32
  }
  func.func @transform_8(%arg0: i32, %arg1: i32) -> (i32, i32, i32) {
    %c0_i32 = arith.constant 0 : i32
    %c0_i32_0 = arith.constant 0 : i32
    %c0_i32_1 = arith.constant 0 : i32
    %c0_i32_2 = arith.constant 0 : i32
    return %c0_i32, %c0_i32_0, %c0_i32_1 : i32, i32, i32
  }
  func.func @transform_9(%arg0: i32, %arg1: i32) -> (i32, i32, i32) {
    %c0_i32 = arith.constant 0 : i32
    %c0_i32_0 = arith.constant 0 : i32
    %c0_i32_1 = arith.constant 0 : i32
    %c0_i32_2 = arith.constant 0 : i32
    return %c0_i32, %c0_i32_0, %c0_i32_1 : i32, i32, i32
  }
  func.func @transform_10(%arg0: i32, %arg1: i32) -> (i32, i32, i32) {
    %c0_i32 = arith.constant 0 : i32
    %c0_i32_0 = arith.constant 0 : i32
    %c0_i32_1 = arith.constant 0 : i32
    %c0_i32_2 = arith.constant 0 : i32
    return %c0_i32, %c0_i32_0, %c0_i32_1 : i32, i32, i32
  }
  func.func @transform_11(%arg0: i32, %arg1: i32) -> (i32, i32, i32) {
    %c0_i32 = arith.constant 0 : i32
    %c0_i32_0 = arith.constant 0 : i32
    %c0_i32_1 = arith.constant 0 : i32
    %c0_i32_2 = arith.constant 0 : i32
    return %c0_i32, %c0_i32_0, %c0_i32_1 : i32, i32, i32
  }
  func.func @transform_12(%arg0: i32, %arg1: i32) -> (i32, i32, i32) {
    %c0_i32 = arith.constant 0 : i32
    %c0_i32_0 = arith.constant 0 : i32
    %c0_i32_1 = arith.constant 0 : i32
    %c0_i32_2 = arith.constant 0 : i32
    return %c0_i32, %c0_i32_0, %c0_i32_1 : i32, i32, i32
  }
  func.func @transform_13(%arg0: i32, %arg1: i32) -> (i32, i32, i32) {
    %c0_i32 = arith.constant 0 : i32
    %c0_i32_0 = arith.constant 0 : i32
    %c0_i32_1 = arith.constant 0 : i32
    return %arg0, %c0_i32, %c0_i32_0 : i32, i32, i32
  }
}

</mosaic_0001>

<bundles_post_ra>
// kernel: tpu_custom_call.1
= control target key start
LH: loop header
LB: loop body
LE: loop exit
PB: predicated region body
PF: predicated region fallthrough
CT: control target
= control target key end

     0   :  { %18 = vsyncpa [#allocation3], 0  ;;  %s2435_s25 = smov 0   ;;  %s2437_s26 = smov 0   ;;  %s2754_s0 = inlined_call_operand.vmem [shape: f32[2,8,32], index: 0, kind: input, shape index: {}]   ;;  %s2755_s1 = inlined_call_operand.vmem [shape: f32[2,1,32], index: 1, kind: input, shape index: {}]   ;;  %s2756_s2 = inlined_call_operand.vmem [shape: f32[2,1,32], index: 2, kind: input, shape index: {}]   ;;  %s2757_s3 = inlined_call_operand.vmem [shape: bf16[2,32,96], index: 3, kind: input, shape index: {}]   ;;  %s2758_s4 = inlined_call_operand.vmem [shape: f32[2,1,96], index: 4, kind: input, shape index: {}]   ;;  %s2759_s5 = inlined_call_operand.vmem [shape: bf16[2,32,32], index: 5, kind: input, shape index: {}]   ;;  %s2760_s6 = inlined_call_operand.vmem [shape: f32[2,1,32], index: 6, kind: input, shape index: {}]   ;;  %s2761_s7 = inlined_call_operand.vmem [shape: f32[2,1,32], index: 7, kind: input, shape index: {}]   ;;  %s2762_s8 = inlined_call_operand.vmem [shape: f32[2,1,32], index: 8, kind: input, shape index: {}]   ;;  %s2763_s9 = inlined_call_operand.vmem [shape: bf16[2,32,128], index: 9, kind: input, shape index: {}]   ;;  %s2764_s10 = inlined_call_operand.vmem [shape: f32[2,1,128], index: 10, kind: input, shape index: {}]   ;;  %s2765_s11 = inlined_call_operand.vmem [shape: bf16[2,128,32], index: 11, kind: input, shape index: {}]   ;;  %s2766_s12 = inlined_call_operand.vmem [shape: f32[2,1,32], index: 12, kind: input, shape index: {}]   ;;  %s2767_s13 = inlined_call_operand.hbm [shape: f32[2,8,32], index: 13, kind: output, shape index: {}]  }
   0x1   :  { %s2439_s27 = smov 0  }
   0x2 LB: > { %s1919_s28 = sadd.s32 4294967295, %s2345_s27   ;;  %s33_s29 = sadd.s32 1, %s2341_s26  ;;  %s2345_s27 = sphi %s2439_s27, %s24_s27   ;;  %s2341_s26 = sphi %s2437_s26, %s2770_s26   ;;  %s2337_s25 = sphi %s2435_s25, %s2769_s25  }
   0x3   : > { %p34_p0 = scmp.ge.s32.totalorder %s33_s29, 2  ;;  %p1922_p1 = scmp.ge.s32.totalorder %s2345_s27, 1 }
   0x4   : > { %p401_p2 = scmp.lt.s32.totalorder %s2345_s27, 3 }
   0x5   : > { %s2772_s29 = smov (%p34_p0, %s33_s29), 0 }
   0x6   : > { %p402_p3 = pnand %p1922_p1, %p401_p2 }
   0x7   : > { %p1923_p4 = scmp.ne.s32.totalorder (!%p402_p3), %s2337_s25, 0 }
   0x8   : > { %405 = sbr.rel (%p402_p3) target bundleno = 4207 (0x106f), region = 72 }
   0xf   : > { %451 = sbr.rel (%p1923_p4) target bundleno = 22 (0x16), region = 76  ;;  %v452_v0 = vld [vmem:[%s2754_s0] sm:$0xff] (!%p1923_p4)  ;;  %vm454_vm0 = vcmask (!%p1923_p4), 261120   ;;  %v453_v1 = vld [vmem:[%s2754_s0 + $0x8] sm:$0xff] (!%p1923_p4) }
  0x10   : > { %455 = vst.msk [vmem:[#allocation2] sm:$0xff] (!%p1923_p4), %vm454_vm0, %v452_v0  ;;  %456 = vst.msk [vmem:[#allocation2 + $0x8] sm:$0xff] (!%p1923_p4), %vm454_vm0, %v453_v1 }
  0x16 PF: > { %vm463_vm1 = vcmask 261120   ;;  %s1979_s17 = sshll.u32 %s2337_s25, 4  ;;  %v2347_v16 = vmov 0.0   ;;  %vm2348_vm2 = vmmov 0   ;;  %s529_s24 = scalar_lea.vmem %s2758_s4, %s2337_s25  ;;  %vm601_vm7 = vcmask 64512  }
  0x17   : > { %v2463_v2 = vld [vmem:[#allocation2] sm:$0xff]  ;;  %v2465_v3 = vld [vmem:[#allocation2 + $0x8] sm:$0xff]  ;;  %2035 = vmatprep.subr.bf16.mxu0 %v2347_v16  ;;  %s524_s20 = scalar_lea.vmem %s2757_s3, %s1979_s17  ;;  %2039 = vmatprep.mubr.msk.bf16.mxu0 %vm2348_vm2, %v2347_v16  ;;  %s2488_s23 = scalar_lea.vmem %s2759_s5, %s1979_s17  ;;  %vm725_vm8 = vcmask 1043456   ;;  %vm1493_vm9 = vcmask 130048   ;;  %vm1496_vm10 = vcmask 195584  }
  0x18   : > { %v464_v4 = vsel %vm463_vm1, %v2463_v2, 0.0  ;;  %v467_v5 = vsel %vm463_vm1, %v2465_v3, 0.0  ;;  %v2223_v17 = vld [vmem:[%s524_s20] sm:$0xff]   ;;  %2055 = vmatprep.subr.bf16.mxu1 %v2347_v16  ;;  %2057 = vmatprep.mubr.msk.bf16.mxu1 %vm2348_vm2, %v2347_v16  ;;  %s2493_s14 = scalar_lea.vmem %s2763_s9, %s1979_s17  ;;  %v2224_v18 = vld [vmem:[%s524_s20 + $0x8] sm:$0xff]   ;;  %s459_s17 = scalar_lea.vmem %s2755_s1, %s2337_s25 }
  0x19   : > { %465 = vadd.xlane.f32.xlu0 %v464_v4  ;;  %2036 = vmatpush3.bf16.msra.mxu0 %v2223_v17  ;;  %v1924_v37 = vld [vmem:[%s459_s17] ss:$0 sm:$0xff]  ;;  %s461_s20 = scalar_lea.vmem %s2756_s2, %s2337_s25  ;;  %s2349_s30 = smov 96  }
  0x1a   : > { %2037 = vmatprep.subr.bf16.mxu0 %v2347_v16  ;;  %v1925_v41 = vld [vmem:[%s461_s20] ss:$0 sm:$0xff]  ;;  %s2350_s15 = smov 64   ;;  %s2351_s16 = smov 88  }
  0x1b   : > { %v1928_v46 = vld [vmem:[%s529_s24] ss:$0 sm:$0xff]  ;;  %s2352_s17 = smov 120   ;;  %s2353_s18 = smov 56  }
  0x1c   : > { %s2354_s19 = smov 80   ;;  %s2355_s20 = smov 112  }
  0x1d   : > { %468 = vadd.xlane.f32.xlu0 %v467_v5  ;;  %2038 = vmatpush3.bf16.msra.mxu0 %v2224_v18  ;;  %s2356_s21 = smov 48   ;;  %s2357_s22 = smov 72  }
  0x1e   : > { %2043 = vmatprep.subr.bf16.mxu0 %v2347_v16  ;;  %s2358_s24 = smov 104   ;;  %p2715_p5 = scmp.eq.s32.totalorder %s1919_s28, 1 }
  0xa6   : > { %v466_v6 = vpop.xlane.xlu0 %465 }
  0xa7   : > { %v471_v7 = vmul.f32 0.03125, %v466_v6 }
  0xa9   : > { %v473_v8 = vsub.f32 %v2463_v2, %v471_v7 }
  0xaa   : > { %v469_v9 = vpop.xlane.xlu0 %468 }
  0xab   : > { %v472_v10 = vmul.f32 0.03125, %v469_v9  ;;  %v475_v11 = vmul.f32 %v473_v8, %v473_v8 }
  0xad   : > { %v474_v12 = vsub.f32 %v2465_v3, %v472_v10  ;;  %v477_v13 = vsel %vm463_vm1, %v475_v11, 0.0 }
  0xae   : > { %478 = vadd.xlane.f32.xlu1 %v477_v13 }
  0xaf   : > { %v476_v14 = vmul.f32 %v474_v12, %v474_v12 }
  0xb1   : > { %v480_v15 = vsel %vm463_vm1, %v476_v14, 0.0 }
  0xb2   : > { %481 = vadd.xlane.f32.xlu1 %v480_v15 }
 0x13b   : > { %v479_v19 = vpop.xlane.xlu1 %478 }
 0x13c   : > { %v483_v20 = vmul.f32 0.03125, %v479_v19 }
 0x13e   : > { %v485_v21 = vadd.f32 1e-12, %v483_v20 }
 0x13f   : > { %v482_v22 = vpop.xlane.xlu1 %481 }
 0x140   : > { %2237 = vrsqrt.f32 %v485_v21  ;;  %v484_v23 = vmul.f32 0.03125, %v482_v22  ;;  %vm489_vm3 = vcmp.eq.f32.partialorder %v485_v21, inf  ;;  %v492_v27 = vand.u32 2147483648, %v485_v21 }
 0x141   : > { %vm491_vm4 = vcmp.eq.f32.partialorder %v485_v21, 0.0 }
 0x142   : > { %v486_v24 = vadd.f32 1e-12, %v484_v23 }
 0x144   : > { %2239 = vrsqrt.f32 %v486_v24  ;;  %vm496_vm5 = vcmp.eq.f32.partialorder %v486_v24, inf  ;;  %v499_v32 = vand.u32 2147483648, %v486_v24  ;;  %vm498_vm6 = vcmp.eq.f32.partialorder %v486_v24, 0.0 }
 0x14a   : > { %v2238_v25 = vpop.eup %2237 }
 0x14b   : > { %v488_v26 = vmul.f32 %v2238_v25, %v485_v21 }
 0x14d   : > { %v490_v28 = vsel %vm489_vm3, %v485_v21, %v488_v26 }
 0x14e   : > { %v493_v29 = vsel %vm491_vm4, %v492_v27, %v490_v28  ;;  %v2240_v30 = vpop.eup %2239 }
 0x14f   : > { %2241 = vrcp.f32 %v493_v29  ;;  %v495_v31 = vmul.f32 %v2240_v30, %v486_v24 }
 0x151   : > { %v497_v33 = vsel %vm496_vm5, %v486_v24, %v495_v31 }
 0x152   : > { %v500_v34 = vsel %vm498_vm6, %v499_v32, %v497_v33 }
 0x153   : > { %2243 = vrcp.f32 %v500_v34 }
 0x159   : > { %v2242_v35 = vpop.eup %2241 }
 0x15a   : > { %v502_v36 = vmul.f32 %v2242_v35, %v473_v8 }
 0x15c   : > { %v511_v40 = vmul.f32 %v1924_v37, %v502_v36 }
 0x15d   : > { %v2244_v38 = vpop.eup %2243 }
 0x15e   : > { %v504_v39 = vmul.f32 %v2244_v38, %v474_v12  ;;  %v519_v43 = vadd.f32 %v1925_v41, %v511_v40 }
 0x160   : > { %v512_v42 = vmul.f32 %v1924_v37, %v504_v39 }
 0x162   : > { %v520_v44 = vadd.f32 %v1925_v41, %v512_v42 }
 0x164   : > { %v521_v45 = vpack.c.bf16 %v520_v44, %v519_v43 }
 0x166   : > { %2040 = vmatmul.mubr.msk.bf16.vlgmr.msra.gmra.mrb[0].mxu0 %vm463_vm1, %v521_v45 }
 0x167   : > { %2045 = vmatprep.mubr.msk.bf16.mxu0 %vm2348_vm2, %v2347_v16 }
 0x239   : > { %v586_v47 = vpop.f32.mrb[0].mxu0 }
 0x23a   : > { %v587_v48 = vadd.f32 %v1928_v46, %v586_v47  ;;  %v2041_v49 = vpop.f32.mrb[1].mxu0 }
 0x23b   : > { %v589_v50 = vpop.f32.mrb[2].mxu0 }
 0x23c   : > { %v2512_v51 = vpack.c.bf16 %v587_v48, %v587_v48  ;;  %v590_v52 = vadd.f32 %v1928_v46, %v589_v50  ;;  %v2042_v53 = vpop.f32.mrb[3].mxu0 }
 0x23e   : > { %v2514_v54 = vpack.c.bf16 %v590_v52, %v590_v52  ;;  %599 = vrot.lane.b32.xlu0 %v2512_v51, %s2349_s30 }
 0x240   : > { %648 = vrot.lane.b32.xlu1 %v2514_v54, %s2349_s30  ;;  %s2359_s30 = smov 40  }
 0x2b0   : > { %v600_v55 = vpop.permute.xlu0 %599 }
 0x2b1   : > { %v606_v56 = vsel %vm601_vm7, %v600_v55, 0 }
 0x2b2   : > { %2044 = vmatpush3.bf16.xpose.msra.mxu0 %v606_v56  ;;  %v649_v57 = vpop.permute.xlu1 %648 }
 0x2b3   : > { %2049 = vmatprep.subr.bf16.mxu0 %v2347_v16  ;;  %v654_v58 = vsel %vm601_vm7, %v649_v57, 0 }
 0x2b9   : > { %2046 = vmatmul.mubr.msk.bf16.vlgmr.msra.gmra.mrb[4].mxu0 %vm601_vm7, %v2512_v51 }
 0x2ba   : > { %2050 = vmatpush3.bf16.xpose.msra.mxu0 %v654_v58  ;;  %2051 = vmatprep.mubr.msk.bf16.mxu0 %vm2348_vm2, %v2347_v16 }
 0x2bb   : > { %2061 = vmatprep.subr.bf16.mxu0 %v2347_v16 }
 0x2c1   : > { %2052 = vmatmul.mubr.msk.bf16.vlgmr.msra.gmra.mrb[8].mxu0 %vm601_vm7, %v2514_v54 }
 0x2c2   : > { %2063 = vmatprep.mubr.msk.bf16.mxu0 %vm2348_vm2, %v2347_v16 }
 0x38c   : > { %v642_v59 = vpop.f32.mrb[4].mxu0 }
 0x38d   : > { %v2047_v60 = vpop.f32.mrb[5].mxu0  ;;  %v696_v61 = vsel %vm601_vm7, %v642_v59, -inf }
 0x38e   : > { %697 = vmax.xlane.f32.xlu1 %v696_v61  ;;  %v645_v62 = vpop.f32.mrb[6].mxu0 }
 0x38f   : > { %v2048_v63 = vpop.f32.mrb[7].mxu0 }
 0x394   : > { %v690_v0 = vpop.f32.mrb[8].mxu0 }
 0x395   : > { %v2053_v1 = vpop.f32.mrb[9].mxu0  ;;  %v699_v4 = vsel %vm601_vm7, %v690_v0, -inf }
 0x396   : > { %700 = vmax.xlane.f32.xlu0 %v699_v4  ;;  %v693_v5 = vpop.f32.mrb[10].mxu0 }
 0x397   : > { %v2054_v6 = vpop.f32.mrb[11].mxu0 }
 0x39f   : > { %769 = vrot.lane.b32.xlu1 %v2514_v54, %s2350_s15 }
 0x3a3   : > { %820 = vrot.lane.b32.xlu1 %v2512_v51, %s2351_s16 }
 0x41b   : > { %v698_v7 = vpop.xlane.xlu1 %697 }
 0x41c   : > { %v702_v8 = vsub.f32 %v642_v59, %v698_v7 }
 0x41e   : > { %v704_v9 = vmul.f32 1.442695, %v702_v8 }
 0x41f   : > { %v770_v10 = vpop.permute.xlu1 %769 }
 0x420   : > { %2245 = vpow2.f32 %v704_v9  ;;  %v775_v11 = vsel %vm725_vm8, %v770_v10, 0 }
 0x421   : > { %2062 = vmatpush3.bf16.msra.mxu0 %v775_v11 }
 0x422   : > { %2073 = vmatprep.subr.bf16.mxu0 %v2347_v16 }
 0x423   : > { %v701_v12 = vpop.xlane.xlu0 %700  ;;  %v821_v21 = vpop.permute.xlu1 %820 }
 0x424   : > { %v703_v13 = vsub.f32 %v690_v0, %v701_v12  ;;  %v826_v28 = vsel %vm601_vm7, %v821_v21, 0 }
 0x426   : > { %v706_v14 = vmul.f32 1.442695, %v703_v13 }
 0x428   : > { %2247 = vpow2.f32 %v706_v14 }
 0x42a   : > { %v2246_v15 = vpop.eup %2245 }
 0x42b   : > { %v708_v17 = vsel %vm601_vm7, %v2246_v15, 0.0 }
 0x42c   : > { %709 = vadd.xlane.f32.xlu0 %v708_v17 }
 0x432   : > { %v2248_v18 = vpop.eup %2247 }
 0x433   : > { %v711_v19 = vsel %vm601_vm7, %v2248_v18, 0.0 }
 0x434   : > { %712 = vadd.xlane.f32.xlu1 %v711_v19 }
 0x442   : > { %720 = vrot.lane.b32.xlu0 %v2512_v51, %s2350_s15  ;;  %s2360_s15 = smov 8  }
 0x445   : > { %870 = vrot.lane.b32.xlu1 %v2514_v54, %s2351_s16  ;;  %s2361_s16 = smov 16  }
 0x446   : > { %818 = vrot.lane.b32.xlu0 %v2512_v51, %s2352_s17 }
 0x449   : > { %868 = vrot.lane.b32.xlu1 %v2514_v54, %s2352_s17  ;;  %s2362_s17 = smov 24  }
 0x4b9   : > { %v710_v20 = vpop.xlane.xlu0 %709 }
 0x4ba   : > { %2249 = vrcp.f32 %v710_v20 }
 0x4bd   : > { %v721_v22 = vpop.permute.xlu0 %720 }
 0x4be   : > { %v727_v23 = vsel %vm725_vm8, %v721_v22, 0 }
 0x4bf   : > { %2056 = vmatpush3.bf16.msra.mxu1 %v727_v23 }
 0x4c0   : > { %2067 = vmatprep.subr.bf16.mxu1 %v2347_v16 }
 0x4c1   : > { %v713_v24 = vpop.xlane.xlu1 %712  ;;  %v819_v33 = vpop.permute.xlu0 %818 }
 0x4c2   : > { %2251 = vrcp.f32 %v713_v24 }
 0x4c4   : > { %v2250_v25 = vpop.eup %2249 }
 0x4c5   : > { %v716_v26 = vmul.f32 %v2250_v25, %v2246_v15  ;;  %v871_v31 = vpop.permute.xlu1 %870 }
 0x4c6   : > { %v876_v34 = vsel %vm601_vm7, %v871_v31, 0 }
 0x4c7   : > { %v718_v27 = vpack.c.bf16 %v716_v26, %v716_v26 }
 0x4c9   : > { %2058 = vmatmul.mubr.msk.bf16.vlgmr.msra.gmra.mrb[0].mxu1 %vm601_vm7, %v718_v27  ;;  %v869_v35 = vpop.permute.xlu1 %868 }
 0x4ca   : > { %2068 = vmatpush3.bf16.xpose.msra.mxu1 %v826_v28  ;;  %2069 = vmatprep.mubr.msk.bf16.mxu1 %vm2348_vm2, %v2347_v16 }
 0x4cb   : > { %2079 = vmatprep.subr.bf16.mxu1 %v2347_v16 }
 0x4cc   : > { %v2252_v29 = vpop.eup %2251 }
 0x4cd   : > { %v717_v30 = vmul.f32 %v2252_v29, %v2248_v18 }
 0x4cf   : > { %v719_v32 = vpack.c.bf16 %v717_v30, %v717_v30 }
 0x4d1   : > { %2064 = vmatmul.mubr.msk.bf16.vlgmr.msra.gmra.mrb[12].mxu0 %vm601_vm7, %v719_v32  ;;  %2070 = vmatmul.mubr.msk.bf16.vlgmr.msra.gmra.mrb[4].mxu1 %vm601_vm7, %v819_v33 }
 0x4d2   : > { %2074 = vmatpush3.bf16.xpose.msra.mxu0 %v876_v34  ;;  %2075 = vmatprep.mubr.msk.bf16.mxu0 %vm2348_vm2, %v2347_v16 }
 0x4d3   : > { %2085 = vmatprep.subr.bf16.mxu0 %v2347_v16  ;;  %2081 = vmatprep.mubr.msk.bf16.mxu1 %vm2348_vm2, %v2347_v16 }
 0x4d9   : > { %2076 = vmatmul.mubr.msk.bf16.vlgmr.msra.gmra.mrb[16].mxu0 %vm601_vm7, %v869_v35 }
 0x4da   : > { %2087 = vmatprep.mubr.msk.bf16.mxu0 %vm2348_vm2, %v2347_v16 }
 0x59c   : > { %v2560_v36 = vpop.f32.mrb[0].mxu1 }
 0x59d   : > { %v2059_v37 = vpop.f32.mrb[1].mxu1 }
 0x59e   : > { %v766_v38 = vpop.f32.mrb[2].mxu1 }
 0x59f   : > { %v2060_v39 = vpop.f32.mrb[3].mxu1 }
 0x5a4   : > { %v2562_v40 = vpop.f32.mrb[12].mxu0  ;;  %v862_v41 = vpop.f32.mrb[4].mxu1 }
 0x5a5   : > { %v817_v42 = vpack.c.bf16 %v2562_v40, %v2560_v36  ;;  %v2065_v43 = vpop.f32.mrb[13].mxu0  ;;  %v2071_v44 = vpop.f32.mrb[5].mxu1  ;;  %v918_v45 = vsel %vm601_vm7, %v862_v41, -inf }
 0x5a6   : > { %919 = vmax.xlane.f32.xlu0 %v918_v45  ;;  %v814_v46 = vpop.f32.mrb[14].mxu0  ;;  %v865_v47 = vpop.f32.mrb[6].mxu1 }
 0x5a7   : > { %v2066_v48 = vpop.f32.mrb[15].mxu0  ;;  %v2072_v49 = vpop.f32.mrb[7].mxu1 }
 0x5ac   : > { %v912_v50 = vpop.f32.mrb[16].mxu0 }
 0x5ad   : > { %v2077_v52 = vpop.f32.mrb[17].mxu0  ;;  %v921_v53 = vsel %vm601_vm7, %v912_v50, -inf }
 0x5ae   : > { %922 = vmax.xlane.f32.xlu1 %v921_v53  ;;  %v915_v55 = vpop.f32.mrb[18].mxu0 }
 0x5af   : > { %v2078_v56 = vpop.f32.mrb[19].mxu0 }
 0x5bf   : > { %990 = vrot.lane.b32.xlu1 %v2514_v54, %s2353_s18 }
 0x5c3   : > { %1041 = vrot.lane.b32.xlu1 %v2512_v51, %s2354_s19 }
 0x5c7   : > { %1091 = vrot.lane.b32.xlu1 %v2514_v54, %s2354_s19  ;;  %s1505_s19 = scalar_lea.vmem %s2760_s6, %s2337_s25 }
 0x5cb   : > { %1089 = vrot.lane.b32.xlu1 %v2514_v54, %s2355_s20 }
 0x633   : > { %v920_v57 = vpop.xlane.xlu0 %919 }
 0x634   : > { %v924_v58 = vsub.f32 %v862_v41, %v920_v57 }
 0x636   : > { %v926_v59 = vmul.f32 1.442695, %v924_v58 }
 0x638   : > { %2253 = vpow2.f32 %v926_v59 }
 0x63b   : > { %v923_v60 = vpop.xlane.xlu1 %922 }
 0x63c   : > { %v925_v61 = vsub.f32 %v912_v50, %v923_v60 }
 0x63e   : > { %v928_v62 = vmul.f32 1.442695, %v925_v61 }
 0x63f   : > { %v991_v63 = vpop.permute.xlu1 %990 }
 0x640   : > { %2255 = vpow2.f32 %v928_v62  ;;  %v996_v0 = vsel %vm725_vm8, %v991_v63, 0 }
 0x641   : > { %2086 = vmatpush3.bf16.msra.mxu0 %v996_v0 }
 0x642   : > { %v2254_v1 = vpop.eup %2253  ;;  %2097 = vmatprep.subr.bf16.mxu0 %v2347_v16 }
 0x643   : > { %v930_v4 = vsel %vm601_vm7, %v2254_v1, 0.0  ;;  %v1042_v14 = vpop.permute.xlu1 %1041 }
 0x644   : > { %931 = vadd.xlane.f32.xlu0 %v930_v4  ;;  %v1047_v19 = vsel %vm601_vm7, %v1042_v14, 0 }
 0x647   : > { %v1092_v18 = vpop.permute.xlu1 %1091 }
 0x648   : > { %v1097_v21 = vsel %vm601_vm7, %v1092_v18, 0 }
 0x64a   : > { %v2256_v5 = vpop.eup %2255 }
 0x64b   : > { %v933_v6 = vsel %vm601_vm7, %v2256_v5, 0.0  ;;  %v1090_v23 = vpop.permute.xlu1 %1089 }
 0x64c   : > { %934 = vadd.xlane.f32.xlu0 %v933_v6 }
 0x662   : > { %942 = vrot.lane.b32.xlu0 %v2512_v51, %s2353_s18 }
 0x666   : > { %1039 = vrot.lane.b32.xlu0 %v2512_v51, %s2355_s20  ;;  %s1637_s20 = scalar_lea.vmem %s2764_s10, %s2337_s25 }
 0x6d1   : > { %v932_v7 = vpop.xlane.xlu0 %931 }
 0x6d2   : > { %2257 = vrcp.f32 %v932_v7 }
 0x6d9   : > { %v935_v8 = vpop.xlane.xlu0 %934 }
 0x6da   : > { %2259 = vrcp.f32 %v935_v8 }
 0x6dc   : > { %v2258_v9 = vpop.eup %2257 }
 0x6dd   : > { %v938_v10 = vmul.f32 %v2258_v9, %v2254_v1  ;;  %v943_v11 = vpop.permute.xlu0 %942 }
 0x6de   : > { %v948_v12 = vsel %vm725_vm8, %v943_v11, 0 }
 0x6df   : > { %2080 = vmatpush3.bf16.msra.mxu1 %v948_v12  ;;  %v940_v13 = vpack.c.bf16 %v938_v10, %v938_v10 }
 0x6e0   : > { %2091 = vmatprep.subr.bf16.mxu1 %v2347_v16 }
 0x6e1   : > { %v1040_v22 = vpop.permute.xlu0 %1039 }
 0x6e2   : > { %2082 = vmatmul.mubr.msk.bf16.vlgmr.msra.gmra.mrb[8].mxu1 %vm601_vm7, %v940_v13 }
 0x6e3   : > { %2093 = vmatprep.mubr.msk.bf16.mxu1 %vm2348_vm2, %v2347_v16 }
 0x6e4   : > { %v2260_v15 = vpop.eup %2259 }
 0x6e5   : > { %v939_v17 = vmul.f32 %v2260_v15, %v2256_v5 }
 0x6e7   : > { %v941_v20 = vpack.c.bf16 %v939_v17, %v939_v17 }
 0x6e8   : > { %2092 = vmatpush3.bf16.xpose.msra.mxu1 %v1047_v19 }
 0x6e9   : > { %2088 = vmatmul.mubr.msk.bf16.vlgmr.msra.gmra.mrb[20].mxu0 %vm601_vm7, %v941_v20  ;;  %2103 = vmatprep.subr.bf16.mxu1 %v2347_v16 }
 0x6ea   : > { %2098 = vmatpush3.bf16.xpose.msra.mxu0 %v1097_v21  ;;  %2099 = vmatprep.mubr.msk.bf16.mxu0 %vm2348_vm2, %v2347_v16 }
 0x6eb   : > { %2109 = vmatprep.subr.bf16.mxu0 %v2347_v16 }
 0x6ef   : > { %2094 = vmatmul.mubr.msk.bf16.vlgmr.msra.gmra.mrb[12].mxu1 %vm601_vm7, %v1040_v22 }
 0x6f0   : > { %2105 = vmatprep.mubr.msk.bf16.mxu1 %vm2348_vm2, %v2347_v16 }
 0x6f1   : > { %2100 = vmatmul.mubr.msk.bf16.vlgmr.msra.gmra.mrb[24].mxu0 %vm601_vm7, %v1090_v23 }
 0x6f2   : > { %2111 = vmatprep.mubr.msk.bf16.mxu0 %vm2348_vm2, %v2347_v16 }
 0x7b5   : > { %v2596_v24 = vpop.f32.mrb[8].mxu1 }
 0x7b6   : > { %v2083_v25 = vpop.f32.mrb[9].mxu1 }
 0x7b7   : > { %v987_v26 = vpop.f32.mrb[10].mxu1 }
 0x7b8   : > { %v2084_v27 = vpop.f32.mrb[11].mxu1 }
 0x7bc   : > { %v2598_v28 = vpop.f32.mrb[20].mxu0 }
 0x7bd   : > { %v1038_v29 = vpack.c.bf16 %v2598_v28, %v2596_v24  ;;  %v2089_v30 = vpop.f32.mrb[21].mxu0 }
 0x7be   : > { %v1035_v31 = vpop.f32.mrb[22].mxu0 }
 0x7bf   : > { %v2090_v32 = vpop.f32.mrb[23].mxu0 }
 0x7c2   : > { %v1083_v33 = vpop.f32.mrb[12].mxu1 }
 0x7c3   : > { %v2095_v34 = vpop.f32.mrb[13].mxu1  ;;  %v1139_v35 = vsel %vm601_vm7, %v1083_v33, -inf }
 0x7c4   : > { %1140 = vmax.xlane.f32.xlu0 %v1139_v35  ;;  %v1086_v37 = vpop.f32.mrb[14].mxu1  ;;  %v1133_v38 = vpop.f32.mrb[24].mxu0 }
 0x7c5   : > { %v2096_v39 = vpop.f32.mrb[15].mxu1  ;;  %v2101_v41 = vpop.f32.mrb[25].mxu0  ;;  %v1142_v43 = vsel %vm601_vm7, %v1133_v38, -inf }
 0x7c6   : > { %1143 = vmax.xlane.f32.xlu1 %v1142_v43  ;;  %v1136_v44 = vpop.f32.mrb[26].mxu0 }
 0x7c7   : > { %v2102_v45 = vpop.f32.mrb[27].mxu0 }
 0x7d7   : > { %1211 = vrot.lane.b32.xlu1 %v2514_v54, %s2356_s21 }
 0x7db   : > { %1262 = vrot.lane.b32.xlu1 %v2512_v51, %s2357_s22 }
 0x7df   : > { %1312 = vrot.lane.b32.xlu1 %v2514_v54, %s2357_s22 }
 0x7e3   : > { %1310 = vrot.lane.b32.xlu1 %v2514_v54, %s2358_s24 }
 0x851   : > { %v1141_v46 = vpop.xlane.xlu0 %1140 }
 0x852   : > { %v1145_v47 = vsub.f32 %v1083_v33, %v1141_v46 }
 0x853   : > { %v1144_v48 = vpop.xlane.xlu1 %1143 }
 0x854   : > { %v1147_v49 = vmul.f32 1.442695, %v1145_v47  ;;  %v1146_v50 = vsub.f32 %v1133_v38, %v1144_v48 }
 0x856   : > { %2261 = vpow2.f32 %v1147_v49  ;;  %v1149_v52 = vmul.f32 1.442695, %v1146_v50 }
 0x857   : > { %v1212_v53 = vpop.permute.xlu1 %1211 }
 0x858   : > { %2263 = vpow2.f32 %v1149_v52  ;;  %v1217_v55 = vsel %vm725_vm8, %v1212_v53, 0 }
 0x859   : > { %2110 = vmatpush3.bf16.msra.mxu0 %v1217_v55 }
 0x85a   : > { %2121 = vmatprep.subr.bf16.mxu0 %v2347_v16 }
 0x85b   : > { %v1263_v1 = vpop.permute.xlu1 %1262 }
 0x85c   : > { %v1268_v9 = vsel %vm601_vm7, %v1263_v1, 0 }
 0x85f   : > { %v1313_v8 = vpop.permute.xlu1 %1312 }
 0x860   : > { %v2262_v56 = vpop.eup %2261  ;;  %v1318_v11 = vsel %vm601_vm7, %v1313_v8, 0 }
 0x861   : > { %v1151_v57 = vsel %vm601_vm7, %v2262_v56, 0.0 }
 0x862   : > { %v2264_v58 = vpop.eup %2263  ;;  %1152 = vadd.xlane.f32.xlu0 %v1151_v57 }
 0x863   : > { %v1154_v59 = vsel %vm601_vm7, %v2264_v58, 0.0  ;;  %v1311_v13 = vpop.permute.xlu1 %1310 }
 0x866   : > { %1155 = vadd.xlane.f32.xlu0 %v1154_v59  ;;  %v2225_v59 = vld [vmem:[%s2488_s23] sm:$0xff]  }
 0x87c   : > { %1163 = vrot.lane.b32.xlu0 %v2512_v51, %s2356_s21  ;;  %s1570_s21 = scalar_lea.vmem %s2761_s7, %s2337_s25 }
 0x880   : > { %1260 = vrot.lane.b32.xlu0 %v2512_v51, %s2358_s24  ;;  %s1737_s24 = scalar_lea.vmem %s2766_s12, %s2337_s25 }
 0x8ef   : > { %v1153_v60 = vpop.xlane.xlu0 %1152 }
 0x8f0   : > { %2265 = vrcp.f32 %v1153_v60  ;;  %v2226_v60 = vld [vmem:[%s2488_s23 + $0x8] sm:$0xff]  }
 0x8f3   : > { %v1156_v61 = vpop.xlane.xlu0 %1155 }
 0x8f4   : > { %2267 = vrcp.f32 %v1156_v61 }
 0x8f7   : > { %v1164_v62 = vpop.permute.xlu0 %1163 }
 0x8f8   : > { %v1169_v63 = vsel %vm725_vm8, %v1164_v62, 0 }
 0x8f9   : > { %2104 = vmatpush3.bf16.msra.mxu1 %v1169_v63 }
 0x8fa   : > { %v2266_v0 = vpop.eup %2265  ;;  %2115 = vmatprep.subr.bf16.mxu1 %v2347_v16 }
 0x8fb   : > { %v1159_v4 = vmul.f32 %v2266_v0, %v2262_v56  ;;  %v1261_v12 = vpop.permute.xlu0 %1260 }
 0x8fd   : > { %v1161_v5 = vpack.c.bf16 %v1159_v4, %v1159_v4 }
 0x8fe   : > { %v2268_v6 = vpop.eup %2267 }
 0x8ff   : > { %v1160_v7 = vmul.f32 %v2268_v6, %v2264_v58  ;;  %2106 = vmatmul.mubr.msk.bf16.vlgmr.msra.gmra.mrb[16].mxu1 %vm601_vm7, %v1161_v5 }
 0x900   : > { %2117 = vmatprep.mubr.msk.bf16.mxu1 %vm2348_vm2, %v2347_v16 }
 0x901   : > { %v1162_v10 = vpack.c.bf16 %v1160_v7, %v1160_v7 }
 0x902   : > { %2116 = vmatpush3.bf16.xpose.msra.mxu1 %v1268_v9 }
 0x903   : > { %2112 = vmatmul.mubr.msk.bf16.vlgmr.msra.gmra.mrb[28].mxu0 %vm601_vm7, %v1162_v10  ;;  %2127 = vmatprep.subr.bf16.mxu1 %v2347_v16 }
 0x904   : > { %2122 = vmatpush3.bf16.xpose.msra.mxu0 %v1318_v11  ;;  %2123 = vmatprep.mubr.msk.bf16.mxu0 %vm2348_vm2, %v2347_v16 }
 0x905   : > { %2133 = vmatprep.subr.bf16.mxu0 %v2347_v16 }
 0x909   : > { %2118 = vmatmul.mubr.msk.bf16.vlgmr.msra.gmra.mrb[20].mxu1 %vm601_vm7, %v1261_v12 }
 0x90a   : > { %2129 = vmatprep.mubr.msk.bf16.mxu1 %vm2348_vm2, %v2347_v16 }
 0x90b   : > { %2124 = vmatmul.mubr.msk.bf16.vlgmr.msra.gmra.mrb[32].mxu0 %vm601_vm7, %v1311_v13 }
 0x90c   : > { %2135 = vmatprep.mubr.msk.bf16.mxu0 %vm2348_vm2, %v2347_v16 }
 0x9d2   : > { %v1205_v14 = vpop.f32.mrb[16].mxu1 }
 0x9d3   : > { %v2107_v15 = vpop.f32.mrb[17].mxu1 }
 0x9d4   : > { %v1208_v17 = vpop.f32.mrb[18].mxu1 }
 0x9d5   : > { %v2108_v18 = vpop.f32.mrb[19].mxu1 }
 0x9d6   : > { %v1253_v19 = vpop.f32.mrb[28].mxu0 }
 0x9d7   : > { %v1259_v20 = vpack.c.bf16 %v1253_v19, %v1205_v14  ;;  %v2113_v21 = vpop.f32.mrb[29].mxu0  ;;  %v1951_v14 = vld [vmem:[%s1505_s19] ss:$0 sm:$0xff] }
 0x9d8   : > { %v1256_v22 = vpop.f32.mrb[30].mxu0 }
 0x9d9   : > { %v2114_v23 = vpop.f32.mrb[31].mxu0 }
 0x9dc   : > { %v1304_v25 = vpop.f32.mrb[20].mxu1 }
 0x9dd   : > { %v2119_v26 = vpop.f32.mrb[21].mxu1  ;;  %v1360_v27 = vsel %vm601_vm7, %v1304_v25, -inf }
 0x9de   : > { %1361 = vmax.xlane.f32.xlu0 %v1360_v27  ;;  %v1307_v30 = vpop.f32.mrb[22].mxu1  ;;  %v1354_v31 = vpop.f32.mrb[32].mxu0 }
 0x9df   : > { %v2120_v32 = vpop.f32.mrb[23].mxu1  ;;  %v2125_v33 = vpop.f32.mrb[33].mxu0  ;;  %v1363_v34 = vsel %vm601_vm7, %v1354_v31, -inf }
 0x9e0   : > { %1364 = vmax.xlane.f32.xlu1 %v1363_v34  ;;  %v1357_v35 = vpop.f32.mrb[34].mxu0  ;;  %v2227_v34 = vld [vmem:[%s2493_s14] sm:$0xff]  }
 0x9e1   : > { %v2126_v37 = vpop.f32.mrb[35].mxu0  ;;  %v2228_v35 = vld [vmem:[%s2493_s14 + $0x8] sm:$0xff]  }
 0x9f1   : > { %1432 = vrot.lane.b32.xlu1 %v2514_v54, %s2359_s30 }
 0x9f5   : > { %1482 = vrot.lane.b32.xlu1 %v1038_v29, %s2360_s15 }
 0x9f9   : > { %1485 = vrot.lane.b32.xlu1 %v1259_v20, %s2361_s16  ;;  %s1984_s16 = sshll.u32 %s2337_s25, 6 }
 0x9fa   : > { %s1720_s18 = scalar_lea.vmem %s2765_s11, %s1984_s16 }
 0xa6b   : > { %v1362_v38 = vpop.xlane.xlu0 %1361 }
 0xa6c   : > { %v1366_v39 = vsub.f32 %v1304_v25, %v1362_v38 }
 0xa6d   : > { %v1365_v41 = vpop.xlane.xlu1 %1364 }
 0xa6e   : > { %v1368_v43 = vmul.f32 1.442695, %v1366_v39  ;;  %v1367_v44 = vsub.f32 %v1354_v31, %v1365_v41 }
 0xa70   : > { %2269 = vpow2.f32 %v1368_v43  ;;  %v1370_v45 = vmul.f32 1.442695, %v1367_v44 }
 0xa71   : > { %v1433_v46 = vpop.permute.xlu1 %1432 }
 0xa72   : > { %2271 = vpow2.f32 %v1370_v45  ;;  %v1438_v47 = vsel %vm725_vm8, %v1433_v46, 0 }
 0xa73   : > { %2134 = vmatpush3.bf16.msra.mxu0 %v1438_v47 }
 0xa74   : > { %2147 = vmatprep.subr.bf16.mxu0 %v2347_v16 }
 0xa75   : > { %v1483_v8 = vpop.permute.xlu1 %1482 }
 0xa76   : > { %v1492_v10 = vsel %vm601_vm7, %v817_v42, %v1483_v8  ;;  %v2236_v8 = vld [vmem:[%s1720_s18 + $0x38] sm:$0xff]  }
 0xa79   : > { %v1486_v9 = vpop.permute.xlu1 %1485 }
 0xa7a   : > { %v2270_v54 = vpop.eup %2269  ;;  %v1495_v11 = vsel %vm1493_vm9, %v1492_v10, %v1486_v9  ;;  %v1958_v9 = vld [vmem:[%s1637_s20] ss:$0 sm:$0xff] }
 0xa7b   : > { %v1372_v24 = vsel %vm601_vm7, %v2270_v54, 0.0 }
 0xa7c   : > { %v2272_v28 = vpop.eup %2271  ;;  %1373 = vadd.xlane.f32.xlu0 %v1372_v24 }
 0xa7d   : > { %v1375_v29 = vsel %vm601_vm7, %v2272_v28, 0.0 }
 0xa80   : > { %1376 = vadd.xlane.f32.xlu0 %v1375_v29 }
 0xa96   : > { %1384 = vrot.lane.b32.xlu0 %v2512_v51, %s2359_s30  ;;  %s1572_s30 = scalar_lea.vmem %s2762_s8, %s2337_s25 }
 0xb09   : > { %v1374_v48 = vpop.xlane.xlu0 %1373 }
 0xb0a   : > { %2273 = vrcp.f32 %v1374_v48 }
 0xb0d   : > { %v1377_v49 = vpop.xlane.xlu0 %1376 }
 0xb0e   : > { %2275 = vrcp.f32 %v1377_v49 }
 0xb11   : > { %v1385_v50 = vpop.permute.xlu0 %1384 }
 0xb12   : > { %v1390_v52 = vsel %vm725_vm8, %v1385_v50, 0 }
 0xb13   : > { %2128 = vmatpush3.bf16.msra.mxu1 %v1390_v52 }
 0xb14   : > { %v2274_v53 = vpop.eup %2273  ;;  %2139 = vmatprep.subr.bf16.mxu1 %v2347_v16 }
 0xb15   : > { %v1380_v55 = vmul.f32 %v2274_v53, %v2270_v54 }
 0xb17   : > { %v1382_v56 = vpack.c.bf16 %v1380_v55, %v1380_v55  ;;  %v1955_v55 = vld [vmem:[%s1570_s21] ss:$0 sm:$0xff] }
 0xb18   : > { %v2276_v57 = vpop.eup %2275 }
 0xb19   : > { %v1381_v58 = vmul.f32 %v2276_v57, %v2272_v28  ;;  %2130 = vmatmul.mubr.msk.bf16.vlgmr.msra.gmra.mrb[24].mxu1 %vm601_vm7, %v1382_v56 }
 0xb1a   : > { %2143 = vmatprep.mubr.msk.bf16.mxu1 %vm2348_vm2, %v2347_v16  ;;  %2140 = vmatpush3.bf16.msra.mxu1 %v2225_v59 }
 0xb1b   : > { %v1383_v51 = vpack.c.bf16 %v1381_v58, %v1381_v58  ;;  %2141 = vmatprep.subr.bf16.mxu1 %v2347_v16 }
 0xb1d   : > { %2136 = vmatmul.mubr.msk.bf16.vlgmr.msra.gmra.mrb[36].mxu0 %vm601_vm7, %v1383_v51  ;;  %v1956_v51 = vld [vmem:[%s1572_s30] ss:$0 sm:$0xff]  ;;  %s2363_s30 = smov [#allocation2]  }
 0xb1e   : > { %2151 = vmatprep.mubr.msk.bf16.mxu0 %vm2348_vm2, %v2347_v16  ;;  %2142 = vmatpush3.bf16.msra.mxu1 %v2226_v60  ;;  %s1847_s16 = sshll.u32 %s2363_s30, 4  ;;  %s1848_s16 = int_to_ptr.vmem [resolvable:$true] %s1847_s16 }
 0xb1f   : > { %2155 = vmatprep.subr.bf16.mxu1 %v2347_v16  ;;  %2148 = vmatpush3.bf16.msra.mxu0 %v2227_v34  ;;  %s2293_s25 = scalar_lea.vmem %s1848_s16, 256  ;;  %p2300_p9 = scmp.lt.s32.totalorder %s1848_s16, %s1848_s16 }
 0xb20   : > { %2149 = vmatprep.subr.bf16.mxu0 %v2347_v16  ;;  %p2294_p6 = scmp.ne.s32.totalorder %s1848_s16, %s2293_s25  ;;  %p2301_p10 = scmp.lt.s32.totalorder %s2293_s25, %s2293_s25 }
 0xb22   : > { %p2295_p7 = pnand %p2294_p6, %p2715_p5  ;;  %p2302_p11 = por %p2301_p10, %p2300_p9 }
 0xb23   : > { %2150 = vmatpush3.bf16.msra.mxu0 %v2228_v35 }
 0xb24   : > { %p2296_p8 = pneg %p2295_p7 }
 0xb26   : > { %p2303_p12 = pnand %p2302_p11, %p2296_p8 }
 0xbec   : > { %v1426_v61 = vpop.f32.mrb[24].mxu1 }
 0xbed   : > { %v2131_v62 = vpop.f32.mrb[25].mxu1 }
 0xbee   : > { %v1429_v63 = vpop.f32.mrb[26].mxu1 }
 0xbef   : > { %v2132_v0 = vpop.f32.mrb[27].mxu1  ;;  %v2229_v63 = vld [vmem:[%s1720_s18] sm:$0xff]  }
 0xbf0   : > { %v1474_v1 = vpop.f32.mrb[36].mxu0  ;;  %v2230_v0 = vld [vmem:[%s1720_s18 + $0x8] sm:$0xff]  }
 0xbf1   : > { %v1480_v4 = vpack.c.bf16 %v1474_v1, %v1426_v61  ;;  %v2137_v5 = vpop.f32.mrb[37].mxu0  ;;  %v2231_v1 = vld [vmem:[%s1720_s18 + $0x10] sm:$0xff]  }
 0xbf2   : > { %v1477_v6 = vpop.f32.mrb[38].mxu0  ;;  %v2233_v5 = vld [vmem:[%s1720_s18 + $0x20] sm:$0xff]  }
 0xbf3   : > { %1488 = vrot.lane.b32.xlu0 %v1480_v4, %s2362_s17  ;;  %v2138_v7 = vpop.f32.mrb[39].mxu0  ;;  %v2232_v4 = vld [vmem:[%s1720_s18 + $0x18] sm:$0xff]   ;;  %v2234_v6 = vld [vmem:[%s1720_s18 + $0x28] sm:$0xff]  }
 0xbf4   : > { %v2235_v7 = vld [vmem:[%s1720_s18 + $0x30] sm:$0xff]  }
 0xc65   : > { %v1489_v12 = vpop.permute.xlu0 %1488 }
 0xc66   : > { %v1498_v13 = vsel %vm1496_vm10, %v1495_v11, %v1489_v12 }
 0xc67   : > { %2144 = vmatmul.mubr.msk.bf16.vlgmr.msra.gmra.mrb[28].mxu1 %vm463_vm1, %v1498_v13 }
 0xc68   : > { %2171 = vmatprep.mubr.msk.bf16.mxu1 %vm2348_vm2, %v2347_v16  ;;  %2156 = vmatpush3.bf16.msra.mxu1 %v2229_v63 }
 0xc69   : > { %2157 = vmatprep.subr.bf16.mxu1 %v2347_v16 }
 0xc6c   : > { %2158 = vmatpush3.bf16.msra.mxu1 %v2230_v0 }
 0xc6d   : > { %2159 = vmatprep.subr.bf16.mxu1 %v2347_v16 }
 0xc70   : > { %2160 = vmatpush3.bf16.msra.mxu1 %v2231_v1 }
 0xc71   : > { %2161 = vmatprep.subr.bf16.mxu1 %v2347_v16 }
 0xc74   : > { %2162 = vmatpush3.bf16.msra.mxu1 %v2232_v4 }
 0xc75   : > { %2163 = vmatprep.subr.bf16.mxu1 %v2347_v16 }
 0xc78   : > { %2164 = vmatpush3.bf16.msra.mxu1 %v2233_v5 }
 0xc79   : > { %2165 = vmatprep.subr.bf16.mxu1 %v2347_v16 }
 0xc7c   : > { %2166 = vmatpush3.bf16.msra.mxu1 %v2234_v6 }
 0xc7d   : > { %2167 = vmatprep.subr.bf16.mxu1 %v2347_v16 }
 0xc80   : > { %2168 = vmatpush3.bf16.msra.mxu1 %v2235_v7 }
 0xc81   : > { %2169 = vmatprep.subr.bf16.mxu1 %v2347_v16 }
 0xc84   : > { %2170 = vmatpush3.bf16.msra.mxu1 %v2236_v8 }
 0xd3a   : > { %v1561_v15 = vpop.f32.mrb[28].mxu1 }
 0xd3b   : > { %v1562_v17 = vadd.f32 %v1951_v14, %v1561_v15  ;;  %v2145_v18 = vpop.f32.mrb[29].mxu1 }
 0xd3c   : > { %v1564_v19 = vpop.f32.mrb[30].mxu1 }
 0xd3d   : > { %v2668_v36 = vadd.f32 %v1562_v17, %v2463_v2  ;;  %v1565_v40 = vadd.f32 %v1951_v14, %v1564_v19  ;;  %v2146_v42 = vpop.f32.mrb[31].mxu1 }
 0xd3f   : > { %v2671_v20 = vadd.f32 %v1565_v40, %v2465_v3  ;;  %v1574_v21 = vsel %vm463_vm1, %v2668_v36, 0.0 }
 0xd40   : > { %1575 = vadd.xlane.f32.xlu1 %v1574_v21 }
 0xd41   : > { %v1577_v22 = vsel %vm463_vm1, %v2671_v20, 0.0 }
 0xd42   : > { %1578 = vadd.xlane.f32.xlu0 %v1577_v22 }
 0xdcd   : > { %v1576_v23 = vpop.xlane.xlu1 %1575 }
 0xdce   : > { %v1580_v25 = vmul.f32 0.03125, %v1576_v23 }
 0xdcf   : > { %v1579_v26 = vpop.xlane.xlu0 %1578 }
 0xdd0   : > { %v1582_v2 = vsub.f32 %v2668_v36, %v1580_v25  ;;  %v1581_v27 = vmul.f32 0.03125, %v1579_v26 }
 0xdd2   : > { %v1583_v30 = vsub.f32 %v2671_v20, %v1581_v27  ;;  %v1584_v3 = vmul.f32 %v1582_v2, %v1582_v2 }
 0xdd4   : > { %v1586_v31 = vsel %vm463_vm1, %v1584_v3, 0.0  ;;  %v1585_v32 = vmul.f32 %v1583_v30, %v1583_v30 }
 0xdd5   : > { %1587 = vadd.xlane.f32.xlu0 %v1586_v31 }
 0xdd6   : > { %v1589_v33 = vsel %vm463_vm1, %v1585_v32, 0.0 }
 0xdd9   : > { %1590 = vadd.xlane.f32.xlu0 %v1589_v33 }
 0xe62   : > { %v1588_v37 = vpop.xlane.xlu0 %1587 }
 0xe63   : > { %v1592_v38 = vmul.f32 0.03125, %v1588_v37 }
 0xe65   : > { %v1594_v39 = vadd.f32 1e-12, %v1592_v38 }
 0xe66   : > { %v1591_v41 = vpop.xlane.xlu0 %1590 }
 0xe67   : > { %2277 = vrsqrt.f32 %v1594_v39  ;;  %v1593_v43 = vmul.f32 0.03125, %v1591_v41  ;;  %vm1598_vm11 = vcmp.eq.f32.partialorder %v1594_v39, inf  ;;  %v1601_v47 = vand.u32 2147483648, %v1594_v39 }
 0xe68   : > { %vm1600_vm12 = vcmp.eq.f32.partialorder %v1594_v39, 0.0 }
 0xe69   : > { %v1595_v44 = vadd.f32 1e-12, %v1593_v43 }
 0xe6b   : > { %2279 = vrsqrt.f32 %v1595_v44  ;;  %vm1605_vm13 = vcmp.eq.f32.partialorder %v1595_v44, inf  ;;  %v1608_v48 = vand.u32 2147483648, %v1595_v44  ;;  %vm1607_vm14 = vcmp.eq.f32.partialorder %v1595_v44, 0.0 }
 0xe71   : > { %v2278_v45 = vpop.eup %2277 }
 0xe72   : > { %v1597_v46 = vmul.f32 %v2278_v45, %v1594_v39 }
 0xe74   : > { %v1599_v54 = vsel %vm1598_vm11, %v1594_v39, %v1597_v46 }
 0xe75   : > { %v1602_v24 = vsel %vm1600_vm12, %v1601_v47, %v1599_v54  ;;  %v2280_v28 = vpop.eup %2279 }
 0xe76   : > { %2281 = vrcp.f32 %v1602_v24  ;;  %v1604_v29 = vmul.f32 %v2280_v28, %v1595_v44 }
 0xe78   : > { %v1606_v49 = vsel %vm1605_vm13, %v1595_v44, %v1604_v29 }
 0xe79   : > { %v1609_v50 = vsel %vm1607_vm14, %v1608_v48, %v1606_v49 }
 0xe7a   : > { %2283 = vrcp.f32 %v1609_v50 }
 0xe80   : > { %v2282_v52 = vpop.eup %2281 }
 0xe81   : > { %v1611_v53 = vmul.f32 %v2282_v52, %v1582_v2 }
 0xe83   : > { %v1620_v58 = vmul.f32 %v1955_v55, %v1611_v53 }
 0xe84   : > { %v2284_v56 = vpop.eup %2283 }
 0xe85   : > { %v1613_v57 = vmul.f32 %v2284_v56, %v1583_v30  ;;  %v1628_v60 = vadd.f32 %v1956_v51, %v1620_v58  ;;  %v1966_v30 = vld [vmem:[%s1737_s24] ss:$0 sm:$0xff] }
 0xe87   : > { %v1621_v59 = vmul.f32 %v1955_v55, %v1613_v57 }
 0xe89   : > { %v1629_v61 = vadd.f32 %v1956_v51, %v1621_v59 }
 0xe8b   : > { %v1630_v62 = vpack.c.bf16 %v1629_v61, %v1628_v60 }
 0xe8d   : > { %2152 = vmatmul.mubr.msk.bf16.vlgmr.msra.gmra.mrb[40].mxu0 %vm463_vm1, %v1630_v62 }
 0xf60   : > { %v1694_v10 = vpop.f32.mrb[40].mxu0 }
 0xf61   : > { %v1695_v11 = vadd.f32 %v1958_v9, %v1694_v10  ;;  %v2153_v12 = vpop.f32.mrb[41].mxu0 }
 0xf62   : > { %v1697_v13 = vpop.f32.mrb[42].mxu0 }
 0xf63   : > { %v1962_v14 = vmul.f32 -1.702, %v1695_v11  ;;  %v1698_v15 = vadd.f32 %v1958_v9, %v1697_v13  ;;  %v2154_v17 = vpop.f32.mrb[43].mxu0 }
 0xf65   : > { %v1705_v18 = vmul.f32 1.442695, %v1962_v14  ;;  %v1963_v19 = vmul.f32 -1.702, %v1698_v15 }
 0xf67   : > { %2285 = vpow2.f32 %v1705_v18  ;;  %v1707_v40 = vmul.f32 1.442695, %v1963_v19 }
 0xf69   : > { %2287 = vpow2.f32 %v1707_v40 }
 0xf71   : > { %v2286_v16 = vpop.eup %2285 }
 0xf72   : > { %v1709_v42 = vadd.f32 1.0, %v2286_v16 }
 0xf73   : > { %v2288_v21 = vpop.eup %2287 }
 0xf74   : > { %2289 = vrcp.f32 %v1709_v42  ;;  %v1710_v22 = vadd.f32 1.0, %v2288_v21 }
 0xf76   : > { %2291 = vrcp.f32 %v1710_v22 }
 0xf7e   : > { %v2290_v23 = vpop.eup %2289 }
 0xf7f   : > { %v1715_v26 = vmul.f32 %v2290_v23, %v1695_v11 }
 0xf80   : > { %v2292_v25 = vpop.eup %2291 }
 0xf81   : > { %v1716_v2 = vmul.f32 %v2292_v25, %v1698_v15 }
 0xf83   : > { %v1717_v27 = vpack.c.bf16 %v1716_v2, %v1715_v26 }
 0xf85   : > { %2172 = vmatmul.mubr.bf16.vlgmr.msra.gmra.mrb[32].mxu1 %v1717_v27 }
0x1058   : > { %v1827_v3 = vpop.f32.mrb[32].mxu1 }
0x1059   : > { %v1828_v31 = vadd.f32 %v1966_v30, %v1827_v3  ;;  %v2173_v32 = vpop.f32.mrb[33].mxu1 }
0x105a   : > { %v1830_v33 = vpop.f32.mrb[34].mxu1 }
0x105b   : > { %v1834_v34 = vadd.f32 %v1828_v31, %v2668_v36  ;;  %v1831_v35 = vadd.f32 %v1966_v30, %v1830_v33  ;;  %v2174_v37 = vpop.f32.mrb[35].mxu1 }
0x105d   : > { %1836 = vst.msk [vmem:[#allocation2] sm:$0xff] %vm463_vm1, %v1834_v34  ;;  %v1835_v38 = vadd.f32 %v1831_v35, %v2671_v20 }
0x105f   : > { %1837 = vst.msk [vmem:[#allocation2 + $0x8] sm:$0xff] %vm463_vm1, %v1835_v38 }
0x1060   : > { %2306 = shalt.err (!%p2303_p12)
}
0x1061   : > { %s2307_s18 = scalar_lea.hbm %s2767_s13, 256 }
0x1062   : > { %p2308_p13 = scmp.ne.s32.totalorder %s2767_s13, %s2307_s18  ;;  %p2313_p2 = scmp.lt.u32.totalorder %s2307_s18, %s2767_s13 }
0x1064   : > { %p2309_p0 = pnand %p2308_p13, %p2715_p5 }
0x1066   : > { %p2310_p1 = pneg %p2309_p0 }
0x1068   : > { %p2315_p3 = pnand %p2313_p2, %p2310_p1 }
0x106a   : > { %2318 = shalt.err (!%p2315_p3)
}
0x106b   : > { %s2364_s22 = smov 128  }
0x106c   : > { %2176 = dma.vmem_to_hbm [thread:$0]  (%p2715_p5), %s1848_s16, 256, %s2767_s13, [#allocation3], %s2364_s22, %s2364_s22, %s2360_s15  }
0x106d   : > { %2332 = dma.done.wait (%p2715_p5), [#allocation3], 256  }
0x106e   : > { %2334 = vsyncadd (%p2715_p5), [#allocation3], 4294967040 }
0x106f PF: > { %s24_s27 = sadd.s32 1, %s2345_s27   ;;  %s2769_s25 = smov %s2341_s26 }
0x1070   : > { %p21_p4 = scmp.ge.s32.totalorder %s24_s27, 4   ;;  %s2770_s26 = smov %s2772_s29 }
0x1072   :  { %23 = sbr.rel (!%p21_p4) target bundleno = 2 (0x2), region = 116 }
0x1079   :  { %1863 = vsyncpa [#allocation3], 1 }
0x107a   :  { %1865 = vsyncpa [#allocation3 + $0x1], 1 }

</bundles_post_ra>
